<compile_context>
chip_gen: v6e
topology: v6e:2x2x1
jax: 0.10.0
libtpu: 0.0.40
codegen_flags: <defaults>
</compile_context>

<pallas_src>
import functools

import jax
import jax.numpy as jnp
from jax import lax
from jax.experimental import pallas as pl
from jax.experimental.pallas import tpu as pltpu


# ----------------------------- activations ---------------------------------


def _activate(x, activation):
    if activation == 'none':
        return x
    if activation == 'relu':
        return jnp.maximum(x, 0.0)
    if activation == 'lrelu':
        return jnp.where(x >= 0.0, x, 0.2 * x)
    if activation == 'elu':
        return jnp.where(x > 0.0, x, jnp.exp(x) - 1.0)
    if activation == 'selu':
        alpha, scale = 1.6732632423543772, 1.0507009873554805
        return scale * jnp.where(x > 0.0, x, alpha * (jnp.exp(x) - 1.0))
    if activation == 'tanh':
        return jnp.tanh(x)
    if activation == 'sigmoid':
        return jax.nn.sigmoid(x)
    # TODO(synk): 'prelu' needs a learnable per-channel slope input.
    raise NotImplementedError(f"activation '{activation}' not supported")


# ------------------------------- kernels ------------------------------------


def _im2col_matmul(window, w_ref, b_ref, o_ref, p_ref, *, kh, kw, th, wout, cin,
                   activation, compute_dtype):
    """Shared kernel core: build patch matrix, one MXU dot, bias + activation."""
    thw = th * wout
    # Patch matrix P: (TILE_H*Wout, KH*KW*Cin) -- spatial rows, contraction cols.
    for i in range(kh):
        for j in range(kw):
            col0 = (i * kw + j) * cin
            win = window(i, j)                                  # (TILE_H, Wout, Cin)
            p_ref[:, col0:col0 + cin] = (
                win.reshape(thw, cin).astype(compute_dtype))
    # Single matmul: (Cout, K) x (THW, K)^T -> (Cout, THW), f32 accumulation.
    acc = lax.dot_general(
        w_ref[...], p_ref[...],
        dimension_numbers=(((1,), (1,)), ((), ())),
        preferred_element_type=jnp.float32)
    acc = acc + b_ref[...]                                      # (Cout, 1) broadcast
    acc = _activate(acc, activation)
    o_ref[0] = acc.astype(o_ref.dtype)


def _conv_kernel(x_ref, w_ref, b_ref, o_ref, p_ref, *, kh, kw, th, wout, cin,
                 activation, compute_dtype):
    # x_ref: (1, TILE_H + KH - 1, Wp, Cin) -- all needed rows in one block.
    def window(i, j):
        return x_ref[0, i:i + th, j:j + wout, :]

    _im2col_matmul(window, w_ref, b_ref, o_ref, p_ref, kh=kh, kw=kw, th=th,
                   wout=wout, cin=cin, activation=activation,
                   compute_dtype=compute_dtype)


def _conv_kernel_halo(x_ref, halo_ref, w_ref, b_ref, o_ref, p_ref, *, kh, kw,
                      th, wout, cin, activation, compute_dtype):
    # x_ref:    (1, TILE_H, Wp, Cin)  padded rows [t*TILE_H, (t+1)*TILE_H)
    # halo_ref: (1, KH-1,   Wp, Cin)  padded rows [(t+1)*TILE_H, +KH-1)
    def window(i, j):
        if i == 0:
            return x_ref[0, :, j:j + wout, :]
        return jnp.concatenate(
            [x_ref[0, i:, j:j + wout, :], halo_ref[0, :i, j:j + wout, :]],
            axis=0)

    _im2col_matmul(window, w_ref, b_ref, o_ref, p_ref, kh=kh, kw=kw, th=th,
                   wout=wout, cin=cin, activation=activation,
                   compute_dtype=compute_dtype)


# ------------------------------ tiling choice --------------------------------


def _pick_tile_h(hout, wout, wp, cin, cout, kh, kw, xbytes, obytes, cbytes,
                 budget):
    """Largest valid TILE_H whose working set fits the VMEM budget."""
    k = kh * kw * cin
    lanes = 128

    def vmem_bytes(th):
        tiled = th < hout
        in_rows = th if tiled else (hout + kh - 1)
        cin_pad = -(-cin // lanes) * lanes      # minor dim is lane-padded in VMEM
        k_pad = -(-k // lanes) * lanes
        est = 2 * in_rows * wp * cin_pad * xbytes           # double-buffered input
        if tiled and kh > 1:
            est += 2 * (kh - 1) * wp * cin_pad * xbytes     # halo block
        est += 2 * cout * th * wout * obytes                # double-buffered output
        est += th * wout * k_pad * cbytes                   # im2col scratch
        est += 2 * (cout * k_pad * cbytes + cout * 4)       # weights + bias
        return est

    if vmem_bytes(hout) <= budget:
        return hout                                         # one row-tile per image
    cands = [t for t in range(1, hout)
             if hout % t == 0
             and (t * wout) % 128 == 0
             and (kh == 1 or t % (kh - 1) == 0)]
    if not cands:
        return hout
    fitting = [t for t in cands if vmem_bytes(t) <= budget]
    return max(fitting) if fitting else min(cands)


# -------------------------------- wrapper ------------------------------------


def conv2d_layer(x, weight, bias, *, stride=1, padding=0, dilation=1,
                 pad_type='replicate', activation='none', norm='none',
                 compute_dtype=jnp.bfloat16, tile_h=None,
                 vmem_budget_bytes=12 * 1024 * 1024):
    """Conv2dLayer forward. x: (N, Cin, H, W); weight: (Cout, Cin, KH, KW)."""
    if stride != 1 or dilation != 1:
        raise NotImplementedError("TODO(synk): stride>1 / dilation>1")
    if norm != 'none':
        raise NotImplementedError("TODO(synk): 'bn'/'in' norm paths")
    # spectral_norm only re-parameterizes the weight during training; the
    # forward pass with a given weight tensor is identical.

    n, cin, h, w = x.shape
    cout, cin_w, kh, kw = weight.shape
    assert cin == cin_w

    # ---- glue (plain JAX): NCHW -> NHWC + padding ---------------------------
    pad_mode = {'replicate': 'edge', 'reflect': 'reflect',
                'zero': 'constant'}[pad_type]
    xh = jnp.transpose(x, (0, 2, 3, 1))                     # (N, H, W, Cin)
    if padding > 0:
        xh = jnp.pad(xh, ((0, 0), (padding, padding),
                          (padding, padding), (0, 0)), mode=pad_mode)
    hp, wp = h + 2 * padding, w + 2 * padding
    hout, wout = hp - kh + 1, wp - kw + 1
    assert hout > 0 and wout > 0

    k = kh * kw * cin
    # (Cout, Cin, KH, KW) -> (Cout, KH*KW*Cin), matching P's column order.
    w2d = jnp.transpose(weight, (0, 2, 3, 1)).reshape(cout, k).astype(compute_dtype)
    b2d = bias.astype(jnp.float32).reshape(cout, 1)

    xbytes = jnp.dtype(xh.dtype).itemsize
    obytes = jnp.dtype(x.dtype).itemsize
    cbytes = jnp.dtype(compute_dtype).itemsize
    th = tile_h if tile_h is not None else _pick_tile_h(
        hout, wout, wp, cin, cout, kh, kw, xbytes, obytes, cbytes,
        vmem_budget_bytes)
    valid = (th == hout) or (hout % th == 0 and (th * wout) % 128 == 0
                             and (kh == 1 or th % (kh - 1) == 0))
    if not valid:
        th = hout
    n_t = hout // th
    use_halo = (n_t > 1) and (kh > 1)

    statics = dict(kh=kh, kw=kw, th=th, wout=wout, cin=cin,
                   activation=activation, compute_dtype=compute_dtype)
    w_spec = pl.BlockSpec((cout, k), lambda b, t: (0, 0))
    b_spec = pl.BlockSpec((cout, 1), lambda b, t: (0, 0))
    out_spec = pl.BlockSpec((1, cout, th * wout), lambda b, t: (b, 0, t))

    if use_halo:
        halo_blk = th // (kh - 1)   # (t+1)*halo_blk blocks of (kh-1) rows = (t+1)*th
        in_specs = [
            pl.BlockSpec((1, th, wp, cin), lambda b, t: (b, t, 0, 0)),
            pl.BlockSpec((1, kh - 1, wp, cin),
                         lambda b, t: (b, (t + 1) * halo_blk, 0, 0)),
            w_spec, b_spec]
        kernel = functools.partial(_conv_kernel_halo, **statics)
        operands = (xh, xh, w2d, b2d)
    else:
        main_h = th + kh - 1 if n_t == 1 else th   # n_t > 1 here only when kh == 1
        in_specs = [pl.BlockSpec((1, main_h, wp, cin), lambda b, t: (b, t, 0, 0)),
                    w_spec, b_spec]
        kernel = functools.partial(_conv_kernel, **statics)
        operands = (xh, w2d, b2d)

    out_flat = pl.pallas_call(
        kernel,
        out_shape=jax.ShapeDtypeStruct((n, cout, hout * wout), x.dtype),
        grid_spec=pltpu.PrefetchScalarGridSpec(
            num_scalar_prefetch=0,
            grid=(n, n_t),
            in_specs=in_specs,
            out_specs=out_spec,
            scratch_shapes=[pltpu.VMEM((th * wout, k), compute_dtype)]),
        compiler_params=pltpu.CompilerParams(
            dimension_semantics=("parallel", "parallel")),
    )(*operands)

    # Free row-major reshape back to NCHW: (N, Cout, Hout*Wout) -> (N, Cout, Hout, Wout)
    return out_flat.reshape(n, cout, hout, wout)


# ------------------------------ reference ------------------------------------


def _reference(x, weight, bias, *, padding, pad_type, activation,
               operand_dtype=None):
    if operand_dtype is not None:       # round operands like the kernel's MXU feed
        x = x.astype(operand_dtype).astype(jnp.float32)
        weight = weight.astype(operand_dtype).astype(jnp.float32)
    pad_mode = {'replicate': 'edge', 'reflect': 'reflect',
                'zero': 'constant'}[pad_type]
    xp = x
    if padding > 0:
        xp = jnp.pad(x, ((0, 0), (0, 0), (padding, padding),
                         (padding, padding)), mode=pad_mode)
    y = lax.conv_general_dilated(
        xp, weight, window_strides=(1, 1), padding='VALID',
        dimension_numbers=('NCHW', 'OIHW', 'NCHW'),
        precision=lax.Precision.HIGHEST)
    y = y + bias.reshape(1, -1, 1, 1)
    return _activate(y, activation)


if __name__ == "__main__":
    # Config consistent with Conv2dLayer(in=4, out=8, kernel=3, stride=1,
    # padding=1, pad_type='replicate', activation='lrelu', norm='none').
    N, CIN, COUT, H, W, K, PAD = 2, 4, 8, 16, 16, 3, 1
    ACT = 'lrelu'

    key = jax.random.PRNGKey(0)
    kx, kw_, kb = jax.random.split(key, 3)
    x = jax.random.normal(kx, (N, CIN, H, W), dtype=jnp.float32)
    fan_in = CIN * K * K
    bound = 1.0 / (fan_in ** 0.5)
    weight = jax.random.uniform(kw_, (COUT, CIN, K, K), jnp.float32, -bound, bound)
    bias = jax.random.uniform(kb, (COUT,), jnp.float32, -bound, bound)

    # Reference with operands rounded to bf16 (exactly what the kernel feeds
    # the MXU) and f32 accumulation -> tight tolerance.
    ref = _reference(x, weight, bias, padding=PAD, pad_type='replicate',
                     activation=ACT, operand_dtype=jnp.bfloat16)

    # 1) automatic tile selection (fits the VMEM budget -> one row-tile/image).
    out_a = conv2d_layer(x, weight, bias, padding=PAD, pad_type='replicate',
                         activation=ACT)
    out_a = jax.block_until_ready(out_a)
    assert out_a.shape == (N, COUT, H, W)
    assert jnp.allclose(out_a, ref, atol=1e-4, rtol=1e-4), "auto-tile mismatch"

    # 2) forced H-tiling (exercises the halo path: grid (N, 2), TILE_H=8).
    out_b = conv2d_layer(x, weight, bias, padding=PAD, pad_type='replicate',
                         activation=ACT, tile_h=8)
    out_b = jax.block_until_ready(out_b)
    assert jnp.allclose(out_b, ref, atol=1e-4, rtol=1e-4), "halo-tile mismatch"

    print("KERNEL_OK")
</pallas_src>

<mosaic_0001>
module attributes {stable_mosaic.version = 11 : i64} {
  func.func @_conv_kernel(%arg0: i32, %arg1: i32, %arg2: memref<1x18x18x4xf32, #tpu.memory_space<vmem>>, %arg3: memref<8x36xbf16, #tpu.memory_space<vmem>>, %arg4: memref<8x1xf32, #tpu.memory_space<vmem>>, %arg5: memref<1x8x256xf32, #tpu.memory_space<vmem>>, %arg6: memref<256x36xbf16, #tpu.memory_space<vmem>>) attributes {dimension_semantics = [#tpu.dimension_semantics<parallel>, #tpu.dimension_semantics<parallel>], iteration_bounds = array<i64: 2, 1>, scalar_prefetch = 0 : i64, scratch_operands = 1 : i64, tpu.core_type = #tpu.core_type<tc>, window_params = [{transform_indices = @transform_0, window_bounds = array<i64: 1, 18, 18, 4>}, {pipeline_mode = #tpu.pipeline_mode<synchronous>, transform_indices = @transform_1, window_bounds = array<i64: 8, 36>}, {pipeline_mode = #tpu.pipeline_mode<synchronous>, transform_indices = @transform_2, window_bounds = array<i64: 8, 1>}, {transform_indices = @transform_3, window_bounds = array<i64: 1, 8, 256>}]} {
    %c0 = arith.constant 0 : index
    %c0_0 = arith.constant 0 : index
    %c0_1 = arith.constant 0 : index
    %c0_2 = arith.constant 0 : index
    %0 = vector.load %arg2[%c0, %c0_0, %c0_1, %c0_2] : memref<1x18x18x4xf32, #tpu.memory_space<vmem>>, vector<1x16x16x4xf32>
    %1 = vector.shape_cast %0 : vector<1x16x16x4xf32> to vector<16x16x4xf32>
    %2 = vector.shape_cast %1 : vector<16x16x4xf32> to vector<256x4xf32>
    %3 = arith.truncf %2 : vector<256x4xf32> to vector<256x4xbf16>
    %c0_3 = arith.constant 0 : index
    %c0_4 = arith.constant 0 : index
    %4 = vector.load %arg6[%c0_3, %c0_4] : memref<256x36xbf16, #tpu.memory_space<vmem>>, vector<256x4xbf16>
    tpu.vector_store %arg6[%c0_3, %c0_4], %3 {strides = array<i32>} : memref<256x36xbf16, #tpu.memory_space<vmem>>, vector<256x4xbf16>,
    %c0_5 = arith.constant 0 : index
    %c0_6 = arith.constant 0 : index
    %c1 = arith.constant 1 : index
    %c0_7 = arith.constant 0 : index
    %5 = vector.load %arg2[%c0_5, %c0_6, %c1, %c0_7] : memref<1x18x18x4xf32, #tpu.memory_space<vmem>>, vector<1x16x16x4xf32>
    %6 = vector.shape_cast %5 : vector<1x16x16x4xf32> to vector<16x16x4xf32>
    %7 = vector.shape_cast %6 : vector<16x16x4xf32> to vector<256x4xf32>
    %8 = arith.truncf %7 : vector<256x4xf32> to vector<256x4xbf16>
    %c0_8 = arith.constant 0 : index
    %c4 = arith.constant 4 : index
    %9 = vector.load %arg6[%c0_8, %c4] : memref<256x36xbf16, #tpu.memory_space<vmem>>, vector<256x4xbf16>
    tpu.vector_store %arg6[%c0_8, %c4], %8 {strides = array<i32>} : memref<256x36xbf16, #tpu.memory_space<vmem>>, vector<256x4xbf16>,
    %c0_9 = arith.constant 0 : index
    %c0_10 = arith.constant 0 : index
    %c2 = arith.constant 2 : index
    %c0_11 = arith.constant 0 : index
    %10 = vector.load %arg2[%c0_9, %c0_10, %c2, %c0_11] : memref<1x18x18x4xf32, #tpu.memory_space<vmem>>, vector<1x16x16x4xf32>
    %11 = vector.shape_cast %10 : vector<1x16x16x4xf32> to vector<16x16x4xf32>
    %12 = vector.shape_cast %11 : vector<16x16x4xf32> to vector<256x4xf32>
    %13 = arith.truncf %12 : vector<256x4xf32> to vector<256x4xbf16>
    %c0_12 = arith.constant 0 : index
    %c8 = arith.constant 8 : index
    %14 = vector.load %arg6[%c0_12, %c8] : memref<256x36xbf16, #tpu.memory_space<vmem>>, vector<256x4xbf16>
    tpu.vector_store %arg6[%c0_12, %c8], %13 {strides = array<i32>} : memref<256x36xbf16, #tpu.memory_space<vmem>>, vector<256x4xbf16>,
    %c0_13 = arith.constant 0 : index
    %c1_14 = arith.constant 1 : index
    %c0_15 = arith.constant 0 : index
    %c0_16 = arith.constant 0 : index
    %15 = vector.load %arg2[%c0_13, %c1_14, %c0_15, %c0_16] : memref<1x18x18x4xf32, #tpu.memory_space<vmem>>, vector<1x16x16x4xf32>
    %16 = vector.shape_cast %15 : vector<1x16x16x4xf32> to vector<16x16x4xf32>
    %17 = vector.shape_cast %16 : vector<16x16x4xf32> to vector<256x4xf32>
    %18 = arith.truncf %17 : vector<256x4xf32> to vector<256x4xbf16>
    %c0_17 = arith.constant 0 : index
    %c12 = arith.constant 12 : index
    %19 = vector.load %arg6[%c0_17, %c12] : memref<256x36xbf16, #tpu.memory_space<vmem>>, vector<256x4xbf16>
    tpu.vector_store %arg6[%c0_17, %c12], %18 {strides = array<i32>} : memref<256x36xbf16, #tpu.memory_space<vmem>>, vector<256x4xbf16>,
    %c0_18 = arith.constant 0 : index
    %c1_19 = arith.constant 1 : index
    %c1_20 = arith.constant 1 : index
    %c0_21 = arith.constant 0 : index
    %20 = vector.load %arg2[%c0_18, %c1_19, %c1_20, %c0_21] : memref<1x18x18x4xf32, #tpu.memory_space<vmem>>, vector<1x16x16x4xf32>
    %21 = vector.shape_cast %20 : vector<1x16x16x4xf32> to vector<16x16x4xf32>
    %22 = vector.shape_cast %21 : vector<16x16x4xf32> to vector<256x4xf32>
    %23 = arith.truncf %22 : vector<256x4xf32> to vector<256x4xbf16>
    %c0_22 = arith.constant 0 : index
    %c16 = arith.constant 16 : index
    %24 = vector.load %arg6[%c0_22, %c16] : memref<256x36xbf16, #tpu.memory_space<vmem>>, vector<256x4xbf16>
    tpu.vector_store %arg6[%c0_22, %c16], %23 {strides = array<i32>} : memref<256x36xbf16, #tpu.memory_space<vmem>>, vector<256x4xbf16>,
    %c0_23 = arith.constant 0 : index
    %c1_24 = arith.constant 1 : index
    %c2_25 = arith.constant 2 : index
    %c0_26 = arith.constant 0 : index
    %25 = vector.load %arg2[%c0_23, %c1_24, %c2_25, %c0_26] : memref<1x18x18x4xf32, #tpu.memory_space<vmem>>, vector<1x16x16x4xf32>
    %26 = vector.shape_cast %25 : vector<1x16x16x4xf32> to vector<16x16x4xf32>
    %27 = vector.shape_cast %26 : vector<16x16x4xf32> to vector<256x4xf32>
    %28 = arith.truncf %27 : vector<256x4xf32> to vector<256x4xbf16>
    %c0_27 = arith.constant 0 : index
    %c20 = arith.constant 20 : index
    %29 = vector.load %arg6[%c0_27, %c20] : memref<256x36xbf16, #tpu.memory_space<vmem>>, vector<256x4xbf16>
    tpu.vector_store %arg6[%c0_27, %c20], %28 {strides = array<i32>} : memref<256x36xbf16, #tpu.memory_space<vmem>>, vector<256x4xbf16>,
    %c0_28 = arith.constant 0 : index
    %c2_29 = arith.constant 2 : index
    %c0_30 = arith.constant 0 : index
    %c0_31 = arith.constant 0 : index
    %30 = vector.load %arg2[%c0_28, %c2_29, %c0_30, %c0_31] : memref<1x18x18x4xf32, #tpu.memory_space<vmem>>, vector<1x16x16x4xf32>
    %31 = vector.shape_cast %30 : vector<1x16x16x4xf32> to vector<16x16x4xf32>
    %32 = vector.shape_cast %31 : vector<16x16x4xf32> to vector<256x4xf32>
    %33 = arith.truncf %32 : vector<256x4xf32> to vector<256x4xbf16>
    %c0_32 = arith.constant 0 : index
    %c24 = arith.constant 24 : index
    %34 = vector.load %arg6[%c0_32, %c24] : memref<256x36xbf16, #tpu.memory_space<vmem>>, vector<256x4xbf16>
    tpu.vector_store %arg6[%c0_32, %c24], %33 {strides = array<i32>} : memref<256x36xbf16, #tpu.memory_space<vmem>>, vector<256x4xbf16>,
    %c0_33 = arith.constant 0 : index
    %c2_34 = arith.constant 2 : index
    %c1_35 = arith.constant 1 : index
    %c0_36 = arith.constant 0 : index
    %35 = vector.load %arg2[%c0_33, %c2_34, %c1_35, %c0_36] : memref<1x18x18x4xf32, #tpu.memory_space<vmem>>, vector<1x16x16x4xf32>
    %36 = vector.shape_cast %35 : vector<1x16x16x4xf32> to vector<16x16x4xf32>
    %37 = vector.shape_cast %36 : vector<16x16x4xf32> to vector<256x4xf32>
    %38 = arith.truncf %37 : vector<256x4xf32> to vector<256x4xbf16>
    %c0_37 = arith.constant 0 : index
    %c28 = arith.constant 28 : index
    %39 = vector.load %arg6[%c0_37, %c28] : memref<256x36xbf16, #tpu.memory_space<vmem>>, vector<256x4xbf16>
    tpu.vector_store %arg6[%c0_37, %c28], %38 {strides = array<i32>} : memref<256x36xbf16, #tpu.memory_space<vmem>>, vector<256x4xbf16>,
    %c0_38 = arith.constant 0 : index
    %c2_39 = arith.constant 2 : index
    %c2_40 = arith.constant 2 : index
    %c0_41 = arith.constant 0 : index
    %40 = vector.load %arg2[%c0_38, %c2_39, %c2_40, %c0_41] : memref<1x18x18x4xf32, #tpu.memory_space<vmem>>, vector<1x16x16x4xf32>
    %41 = vector.shape_cast %40 : vector<1x16x16x4xf32> to vector<16x16x4xf32>
    %42 = vector.shape_cast %41 : vector<16x16x4xf32> to vector<256x4xf32>
    %43 = arith.truncf %42 : vector<256x4xf32> to vector<256x4xbf16>
    %c0_42 = arith.constant 0 : index
    %c32 = arith.constant 32 : index
    %44 = vector.load %arg6[%c0_42, %c32] : memref<256x36xbf16, #tpu.memory_space<vmem>>, vector<256x4xbf16>
    tpu.vector_store %arg6[%c0_42, %c32], %43 {strides = array<i32>} : memref<256x36xbf16, #tpu.memory_space<vmem>>, vector<256x4xbf16>,
    %c0_43 = arith.constant 0 : index
    %c0_44 = arith.constant 0 : index
    %45 = vector.load %arg3[%c0_43, %c0_44] : memref<8x36xbf16, #tpu.memory_space<vmem>>, vector<8x36xbf16>
    %c0_45 = arith.constant 0 : index
    %c0_46 = arith.constant 0 : index
    %46 = vector.load %arg6[%c0_45, %c0_46] : memref<256x36xbf16, #tpu.memory_space<vmem>>, vector<256x36xbf16>
    %cst = arith.constant dense<0.000000e+00> : vector<8x256xf32>
    %47 = tpu.matmul %45, %46, %cst {dimension_numbers = #tpu.dot_dimension_numbers<[1], [1], [0], [0], [0, 0, 1, 0], [], []>} : vector<8x36xbf16>, vector<256x36xbf16>, vector<8x256xf32> -> vector<8x256xf32>
    %c0_47 = arith.constant 0 : index
    %c0_48 = arith.constant 0 : index
    %48 = vector.load %arg4[%c0_47, %c0_48] : memref<8x1xf32, #tpu.memory_space<vmem>>, vector<8x1xf32>
    %49 = vector.broadcast %48 : vector<8x1xf32> to vector<8x256xf32>
    %50 = arith.addf %47, %49 : vector<8x256xf32>
    %cst_49 = arith.constant 0.000000e+00 : f32
    %51 = vector.broadcast %cst_49 : f32 to vector<8x256xf32>
    %52 = arith.cmpf oge, %50, %51 : vector<8x256xf32>
    %cst_50 = arith.constant 2.000000e-01 : f32
    %53 = vector.broadcast %cst_50 : f32 to vector<8x256xf32>
    %54 = arith.mulf %53, %50 : vector<8x256xf32>
    %55 = arith.select %52, %50, %54 : vector<8x256xi1>, vector<8x256xf32>
    %c0_51 = arith.constant 0 : index
    %c0_52 = arith.constant 0 : index
    %c0_53 = arith.constant 0 : index
    %56 = vector.load %arg5[%c0_51, %c0_52, %c0_53] : memref<1x8x256xf32, #tpu.memory_space<vmem>>, vector<1x8x256xf32>
    %57 = vector.shape_cast %56 : vector<1x8x256xf32> to vector<8x256xf32>
    %58 = vector.shape_cast %55 : vector<8x256xf32> to vector<1x8x256xf32>
    tpu.vector_store %arg5[%c0_51, %c0_52, %c0_53], %58 {strides = array<i32>} : memref<1x8x256xf32, #tpu.memory_space<vmem>>, vector<1x8x256xf32>,
    return
  }
  func.func @transform_0(%arg0: i32, %arg1: i32) -> (i32, i32, i32, i32) {
    %c0_i32 = arith.constant 0 : i32
    %c0_i32_0 = arith.constant 0 : i32
    %c0_i32_1 = arith.constant 0 : i32
    return %arg0, %arg1, %c0_i32, %c0_i32_0 : i32, i32, i32, i32
  }
  func.func @transform_1(%arg0: i32, %arg1: i32) -> (i32, i32) {
    %c0_i32 = arith.constant 0 : i32
    %c0_i32_0 = arith.constant 0 : i32
    %c0_i32_1 = arith.constant 0 : i32
    return %c0_i32, %c0_i32_0 : i32, i32
  }
  func.func @transform_2(%arg0: i32, %arg1: i32) -> (i32, i32) {
    %c0_i32 = arith.constant 0 : i32
    %c0_i32_0 = arith.constant 0 : i32
    %c0_i32_1 = arith.constant 0 : i32
    return %c0_i32, %c0_i32_0 : i32, i32
  }
  func.func @transform_3(%arg0: i32, %arg1: i32) -> (i32, i32, i32) {
    %c0_i32 = arith.constant 0 : i32
    %c0_i32_0 = arith.constant 0 : i32
    return %arg0, %c0_i32, %arg1 : i32, i32, i32
  }
}

</mosaic_0001>

<bundles_post_ra>
// kernel: tpu_custom_call.1
= control target key start
LH: loop header
LB: loop body
LE: loop exit
PB: predicated region body
PF: predicated region fallthrough
CT: control target
= control target key end

     0   :  { %8 = vsyncpa [#allocation4], 0  ;;  %s5028_s0 = inlined_call_operand.vmem [shape: f32[2,18,18,4], index: 0, kind: input, shape index: {}]   ;;  %s5029_s1 = inlined_call_operand.vmem [shape: bf16[8,36], index: 1, kind: input, shape index: {}]   ;;  %s5030_s2 = inlined_call_operand.vmem [shape: f32[8,1], index: 2, kind: input, shape index: {}]   ;;  %s5031_s3 = inlined_call_operand.hbm [shape: f32[2,8,256], index: 3, kind: output, shape index: {}]  }
   0x1   :  { %10 = vsyncpa [#allocation4 + $0x1], 0  ;;  %s3785_s12 = smov 0   ;;  %s3787_s13 = smov 0  }
   0x2   :  { %s3789_s14 = smov 0   ;;  %s3791_s15 = smov 0  }
   0x3   :  { %s3793_s16 = smov 0   ;;  %s3795_s17 = smov 0  }
   0x4 LB: > { %s2771_s18 = sadd.s32 4294967295, %s3753_s17   ;;  %s2772_s19 = sadd.s32 4294967294, %s3753_s17   ;;  %s3753_s17 = sphi %s3795_s17, %s16_s17   ;;  %s3749_s16 = sphi %s3793_s16, %s5038_s16   ;;  %s3745_s15 = sphi %s3791_s15, %s5037_s15   ;;  %s3741_s14 = sphi %s3789_s14, %s5036_s14   ;;  %s3737_s13 = sphi %s3787_s13, %s5035_s13   ;;  %s3733_s12 = sphi %s3785_s12, %s5034_s12  }
   0x5   : > { %s28_s20 = sadd.s32 1, %s3749_s16  ;;  %s107_s21 = sadd.s32 1, %s3741_s14 }
   0x6   : > { %p30_p0 = scmp.ge.s32.totalorder %s28_s20, 2  ;;  %p117_p1 = scmp.ne.s32.totalorder %s3741_s14, %s3737_s13 }
   0x7   : > { %p118_p2 = scmp.eq.s32.totalorder %s2771_s18, 1  ;;  %p123_p3 = scmp.ne.s32.totalorder %s3737_s13, %s3733_s12 }
   0x8   : > { %s5040_s20 = smov (%p30_p0, %s28_s20), 0  ;;  %p124_p5 = scmp.eq.s32.totalorder %s2772_s19, 1 }
   0x9   : > { %p3825_p4 = por %p118_p2, %p117_p1  ;;  %s102_s23 = ssub.s32 %s3749_s16, %s5040_s20 }
   0xa   : > { %p2775_p6 = scmp.ge.s32.totalorder %s3753_s17, 1  ;;  %p105_p7 = scmp.eq.s32.totalorder %s102_s23, 0 }
   0xb   : > { %p3832_p8 = por %p124_p5, %p123_p3  ;;  %p162_p9 = scmp.lt.s32.totalorder %s3753_s17, 3 }
   0xc   : > { %s3838_s25 = scalar_select %p105_p7, %s3741_s14, %s107_s21  }
   0xd   : > { %p163_p10 = pnand %p2775_p6, %p162_p9 }
   0xe   : > { %p192_p11 = scmp.lt.s32.totalorder (!%p163_p10), %s3745_s15, 1  ;;  %s3755_s4 = smov (!%p163_p10), 4  }
   0xf   : > { %166 = sbr.rel (%p163_p10) target bundleno = 880 (0x370), region = 32  ;;  %s3756_s5 = smov (!%p163_p10), 8  }
  0x10   : > { %s3757_s6 = smov (!%p163_p10), 12   ;;  %s3758_s7 = smov (!%p163_p10), 16  }
  0x11   : > { %s3759_s8 = smov (!%p163_p10), 20   ;;  %s3760_s9 = smov (!%p163_p10), 24  }
  0x12   : > { %s3761_s10 = smov (!%p163_p10), 28   ;;  %s3762_s11 = smov (!%p163_p10), 32  }
  0x13   : > { %s3568_s28 = sshll.u32 (!%p163_p10), %s3745_s15, 8 }
  0x14   : > { %s193_s26 = scalar_select %p192_p11, %s3745_s15, 1  ;;  %vm364_vm0 = vcmask 27648   ;;  %vm621_vm1 = vcmask 60448   ;;  %vm878_vm2 = vcmask 93248   ;;  %vm1136_vm3 = vcmask 126048  }
  0x15   : > { %vm1393_vm4 = vcmask 158848   ;;  %vm1650_vm5 = vcmask 191648   ;;  %vm1908_vm6 = vcmask 224448   ;;  %vm2165_vm7 = vcmask 257248   ;;  %s3764_s15 = smov [#allocation3]  }
  0x16   : > { %s3595_s27 = smul.u32 432, %s193_s26  ;;  %vm2422_vm8 = vcmask 290048   ;;  %vm2574_vm9 = vcmask 293888   ;;  %s188_s26 = sand.u32 1, %s3737_s13  }
  0x18   : > { %s3845_s30 = scalar_lea.vmem %s5028_s0, %s3595_s27  ;;  %s2776_s27 = sshll.u32 %s188_s26, 4 }
  0x19   : > { %v399_v0 = vld [vmem:[%s3845_s30 + $0x19] sm:$0xff]  ;;  %v397_v1 = vld [vmem:[%s3845_s30 + $0x1] sm:$0xff]  ;;  %v398_v5 = vld [vmem:[%s3845_s30 + $0x9] sm:$0xff]  ;;  %s190_s29 = scalar_lea.vmem [#allocation3], %s2776_s27 }
  0x1a   : > { %v400_v2 = vld [vmem:[%s3845_s30 + $0x21] sm:$0xff]  ;;  %v3314_v3 = vpack.c.bf16 %v399_v0, %v399_v0  ;;  %v3312_v4 = vpack.c.bf16 %v397_v1, %v397_v1  ;;  %v3313_v7 = vpack.c.bf16 %v398_v5, %v398_v5  ;;  %v402_v8 = vld [vmem:[%s3845_s30 + $0x39] sm:$0xff]  ;;  %v401_v9 = vld [vmem:[%s3845_s30 + $0x31] sm:$0xff] }
  0x1b   : > { %v3315_v6 = vpack.c.bf16 %v400_v2, %v400_v2  ;;  %v3317_v10 = vpack.c.bf16 %v402_v8, %v402_v8  ;;  %v3316_v11 = vpack.c.bf16 %v401_v9, %v401_v9  ;;  %v404_v12 = vld [vmem:[%s3845_s30 + $0x51] sm:$0xff]  ;;  %v403_v13 = vld [vmem:[%s3845_s30 + $0x49] sm:$0xff]  ;;  %v405_v17 = vld [vmem:[%s3845_s30 + $0x61] sm:$0xff] }
  0x1c   : > { %529 = vrot.lane.b32.xlu1 %v3314_v3, %s3755_s4  ;;  %525 = vrot.lane.b32.xlu0 %v3312_v4, %s3755_s4  ;;  %v3319_v14 = vpack.c.bf16 %v404_v12, %v404_v12  ;;  %v3318_v15 = vpack.c.bf16 %v403_v13, %v403_v13  ;;  %v406_v16 = vld [vmem:[%s3845_s30 + $0x69] sm:$0xff]  ;;  %v3320_v19 = vpack.c.bf16 %v405_v17, %v405_v17  ;;  %v408_v20 = vld [vmem:[%s3845_s30 + $0x81] sm:$0xff] }
  0x1d   : > { %v3321_v18 = vpack.c.bf16 %v406_v16, %v406_v16  ;;  %v407_v21 = vld [vmem:[%s3845_s30 + $0x79] sm:$0xff]  ;;  %v3323_v22 = vpack.c.bf16 %v408_v20, %v408_v20  ;;  %v409_v25 = vld [vmem:[%s3845_s30 + $0x91] sm:$0xff]  ;;  %v205_v32 = vld [vmem:[%s3845_s30 + $0x8] sm:$0xff] }
  0x1e   : > { %v3322_v23 = vpack.c.bf16 %v407_v21, %v407_v21  ;;  %v410_v24 = vld [vmem:[%s3845_s30 + $0x99] sm:$0xff]  ;;  %v3324_v33 = vpack.c.bf16 %v409_v25, %v409_v25  ;;  %v412_v34 = vld [vmem:[%s3845_s30 + $0xb1] sm:$0xff]  ;;  %v411_v35 = vld [vmem:[%s3845_s30 + $0xa9] sm:$0xff]  ;;  %v3281_v37 = vpack.c.bf16 %v205_v32, %v205_v32 }
  0x1f   : > { %v206_v26 = vld [vmem:[%s3845_s30 + $0x18] sm:$0xff]  ;;  %v204_v27 = vld [vmem:[%s3845_s30] sm:$0xff]  ;;  %v3325_v28 = vpack.c.bf16 %v410_v24, %v410_v24  ;;  %v414_v38 = vld [vmem:[%s3845_s30 + $0xc9] sm:$0xff]  ;;  %v3327_v46 = vpack.c.bf16 %v412_v34, %v412_v34  ;;  %v3899_v47 = vpack.c.bf16 %v411_v35, %v411_v35 }
  0x20   : > { %531 = vrot.lane.b32.xlu1 %v3315_v6, %s3755_s4  ;;  %527 = vrot.lane.b32.xlu0 %v3313_v7, %s3755_s4  ;;  %v3873_v29 = vpack.c.bf16 %v206_v26, %v206_v26  ;;  %v3280_v30 = vpack.c.bf16 %v204_v27, %v204_v27  ;;  %v207_v31 = vld [vmem:[%s3845_s30 + $0x20] sm:$0xff]  ;;  %v209_v39 = vld [vmem:[%s3845_s30 + $0x38] sm:$0xff]  ;;  %366 = vst.msk [vmem:[#allocation2 + $0x4] sm:$0xf] %vm364_vm0, %v3281_v37 }
  0x21   : > { %v3881_v36 = vpack.c.bf16 %v207_v31, %v207_v31  ;;  %v208_v40 = vld [vmem:[%s3845_s30 + $0x30] sm:$0xff]  ;;  %v413_v41 = vld [vmem:[%s3845_s30 + $0xc1] sm:$0xff]  ;;  %v3893_v42 = vpack.c.bf16 %v209_v39, %v209_v39  ;;  %v214_v56 = vld [vmem:[%s3845_s30 + $0x78] sm:$0xff]  ;;  %v3933_v63 = vpack.c.bf16 %v414_v38, %v414_v38 }
  0x22   : > { %367 = vst.msk [vmem:[#allocation2 + $0x8] sm:$0xf] %vm364_vm0, %v3873_v29  ;;  %365 = vst.msk [vmem:[#allocation2] sm:$0xf] %vm364_vm0, %v3280_v30  ;;  %v3895_v43 = vpack.c.bf16 %v208_v40, %v208_v40  ;;  %v211_v44 = vld [vmem:[%s3845_s30 + $0x50] sm:$0xff]  ;;  %v210_v45 = vld [vmem:[%s3845_s30 + $0x48] sm:$0xff]  ;;  %v3926_v58 = vpack.c.bf16 %v214_v56, %v214_v56  ;;  %v3951_v7 = vpack.c.bf16 %v413_v41, %v413_v41 }
  0x23   : > { %368 = vst.msk [vmem:[#allocation2 + $0xc] sm:$0xf] %vm364_vm0, %v3881_v36  ;;  %v3901_v48 = vpack.c.bf16 %v211_v44, %v211_v44  ;;  %v3903_v49 = vpack.c.bf16 %v210_v45, %v210_v45  ;;  %v213_v50 = vld [vmem:[%s3845_s30 + $0x68] sm:$0xff]  ;;  %v212_v51 = vld [vmem:[%s3845_s30 + $0x60] sm:$0xff]  ;;  %370 = vst.msk [vmem:[#allocation2 + $0x14] sm:$0xf] %vm364_vm0, %v3893_v42 }
  0x24   : > { %535 = vrot.lane.b32.xlu1 %v3317_v10, %s3755_s4  ;;  %533 = vrot.lane.b32.xlu0 %v3316_v11, %s3755_s4  ;;  %v215_v52 = vld [vmem:[%s3845_s30 + $0x80] sm:$0xff]  ;;  %369 = vst.msk [vmem:[#allocation2 + $0x10] sm:$0xf] %vm364_vm0, %v3895_v43  ;;  %v3914_v53 = vpack.c.bf16 %v213_v50, %v213_v50  ;;  %v3916_v54 = vpack.c.bf16 %v212_v51, %v212_v51  ;;  %v217_v57 = vld [vmem:[%s3845_s30 + $0x98] sm:$0xff]  ;;  %375 = vst.msk [vmem:[#allocation2 + $0x28] sm:$0xf] %vm364_vm0, %v3926_v58 }
  0x25   : > { %v3918_v55 = vpack.c.bf16 %v215_v52, %v215_v52  ;;  %372 = vst.msk [vmem:[#allocation2 + $0x1c] sm:$0xf] %vm364_vm0, %v3901_v48  ;;  %371 = vst.msk [vmem:[#allocation2 + $0x18] sm:$0xf] %vm364_vm0, %v3903_v49  ;;  %v3928_v59 = vpack.c.bf16 %v217_v57, %v217_v57  ;;  %v216_v60 = vld [vmem:[%s3845_s30 + $0x90] sm:$0xff]  ;;  %v218_v62 = vld [vmem:[%s3845_s30 + $0xa8] sm:$0xff] }
  0x26   : > { %v219_v61 = vld [vmem:[%s3845_s30 + $0xb0] sm:$0xff]  ;;  %v416_v0 = vld [vmem:[%s3845_s30 + $0xe1] sm:$0xff]  ;;  %374 = vst.msk [vmem:[#allocation2 + $0x24] sm:$0xf] %vm364_vm0, %v3914_v53  ;;  %373 = vst.msk [vmem:[#allocation2 + $0x20] sm:$0xf] %vm364_vm0, %v3916_v54  ;;  %v3942_v1 = vpack.c.bf16 %v216_v60, %v216_v60  ;;  %v3946_v3 = vpack.c.bf16 %v218_v62, %v218_v62 }
  0x27   : > { %376 = vst.msk [vmem:[#allocation2 + $0x2c] sm:$0xf] %vm364_vm0, %v3918_v55  ;;  %v3944_v2 = vpack.c.bf16 %v219_v61, %v219_v61  ;;  %v221_v4 = vld [vmem:[%s3845_s30 + $0xc8] sm:$0xff]  ;;  %v220_v5 = vld [vmem:[%s3845_s30 + $0xc0] sm:$0xff]  ;;  %378 = vst.msk [vmem:[#allocation2 + $0x34] sm:$0xf] %vm364_vm0, %v3928_v59 }
  0x28   : > { %539 = vrot.lane.b32.xlu1 %v3319_v14, %s3755_s4  ;;  %537 = vrot.lane.b32.xlu0 %v3318_v15, %s3755_s4  ;;  %v223_v6 = vld [vmem:[%s3845_s30 + $0xe0] sm:$0xff]  ;;  %v3957_v8 = vpack.c.bf16 %v221_v4, %v221_v4  ;;  %v3959_v9 = vpack.c.bf16 %v220_v5, %v220_v5  ;;  %v222_v11 = vld [vmem:[%s3845_s30 + $0xd8] sm:$0xff]  ;;  %377 = vst.msk [vmem:[#allocation2 + $0x30] sm:$0xf] %vm364_vm0, %v3942_v1  ;;  %379 = vst.msk [vmem:[#allocation2 + $0x38] sm:$0xf] %vm364_vm0, %v3946_v3 }
  0x29   : > { %v3961_v10 = vpack.c.bf16 %v223_v6, %v223_v6  ;;  %v225_v12 = vld [vmem:[%s3845_s30 + $0xf8] sm:$0xff]  ;;  %v224_v13 = vld [vmem:[%s3845_s30 + $0xf0] sm:$0xff]  ;;  %380 = vst.msk [vmem:[#allocation2 + $0x3c] sm:$0xf] %vm364_vm0, %v3944_v2  ;;  %v3975_v14 = vpack.c.bf16 %v222_v11, %v222_v11  ;;  %v228_v24 = vld [vmem:[%s3845_s30 + $0x120] sm:$0xff] }
  0x2a   : > { %v3977_v15 = vpack.c.bf16 %v225_v12, %v225_v12  ;;  %v3979_v16 = vpack.c.bf16 %v224_v13, %v224_v13  ;;  %v227_v17 = vld [vmem:[%s3845_s30 + $0x110] sm:$0xff]  ;;  %382 = vst.msk [vmem:[#allocation2 + $0x44] sm:$0xf] %vm364_vm0, %v3957_v8  ;;  %381 = vst.msk [vmem:[#allocation2 + $0x40] sm:$0xf] %vm364_vm0, %v3959_v9  ;;  %v418_v26 = vld [vmem:[%s3845_s30 + $0xf9] sm:$0xff] }
  0x2b   : > { %384 = vst.msk [vmem:[#allocation2 + $0x4c] sm:$0xf] %vm364_vm0, %v3961_v10  ;;  %v3990_v20 = vpack.c.bf16 %v227_v17, %v227_v17  ;;  %383 = vst.msk [vmem:[#allocation2 + $0x48] sm:$0xf] %vm364_vm0, %v3975_v14  ;;  %v417_v30 = vld [vmem:[%s3845_s30 + $0xf1] sm:$0xff]  ;;  %v3333_v31 = vpack.c.bf16 %v418_v26, %v418_v26  ;;  %v231_v32 = vld [vmem:[%s3845_s30 + $0x140] sm:$0xff] }
  0x2c   : > { %543 = vrot.lane.b32.xlu1 %v3321_v18, %s3755_s4  ;;  %541 = vrot.lane.b32.xlu0 %v3320_v19, %s3755_s4  ;;  %v226_v18 = vld [vmem:[%s3845_s30 + $0x108] sm:$0xff]  ;;  %v415_v19 = vld [vmem:[%s3845_s30 + $0xd9] sm:$0xff]  ;;  %386 = vst.msk [vmem:[#allocation2 + $0x54] sm:$0xf] %vm364_vm0, %v3977_v15  ;;  %385 = vst.msk [vmem:[#allocation2 + $0x50] sm:$0xf] %vm364_vm0, %v3979_v16  ;;  %v3332_v34 = vpack.c.bf16 %v417_v30, %v417_v30  ;;  %v4031_v37 = vpack.c.bf16 %v231_v32, %v231_v32 }
  0x2d   : > { %v3992_v21 = vpack.c.bf16 %v226_v18, %v226_v18  ;;  %388 = vst.msk [vmem:[#allocation2 + $0x5c] sm:$0xf] %vm364_vm0, %v3990_v20  ;;  %v4012_v25 = vpack.c.bf16 %v415_v19, %v415_v19  ;;  %v420_v35 = vld [vmem:[%s3845_s30 + $0x111] sm:$0xff]  ;;  %v419_v39 = vld [vmem:[%s3845_s30 + $0x109] sm:$0xff]  ;;  %v421_v52 = vld [vmem:[%s3845_s30 + $0x121] sm:$0xff] }
  0x2e   : > { %392 = vst.msk [vmem:[#allocation2 + $0x6c] sm:$0xf] %vm364_vm0, %v4031_v37  ;;  %v3335_v40 = vpack.c.bf16 %v420_v35, %v420_v35  ;;  %v233_v41 = vld [vmem:[%s3845_s30 + $0x158] sm:$0xff]  ;;  %v232_v44 = vld [vmem:[%s3845_s30 + $0x150] sm:$0xff]  ;;  %v3334_v45 = vpack.c.bf16 %v419_v39, %v419_v39  ;;  %v234_v60 = vld [vmem:[%s3845_s30 + $0x168] sm:$0xff]  ;;  %v3336_v61 = vpack.c.bf16 %v421_v52, %v421_v52 }
  0x2f   : > { %387 = vst.msk [vmem:[#allocation2 + $0x58] sm:$0xf] %vm364_vm0, %v3992_v21  ;;  %v4045_v50 = vpack.c.bf16 %v233_v41, %v233_v41  ;;  %v4047_v51 = vpack.c.bf16 %v232_v44, %v232_v44  ;;  %v235_v57 = vld [vmem:[%s3845_s30 + $0x170] sm:$0xff]  ;;  %v424_v4 = vld [vmem:[%s3845_s30 + $0x141] sm:$0xff]  ;;  %v423_v5 = vld [vmem:[%s3845_s30 + $0x139] sm:$0xff] }
  0x30   : > { %547 = vrot.lane.b32.xlu1 %v3323_v22, %s3755_s4  ;;  %545 = vrot.lane.b32.xlu0 %v3322_v23, %s3755_s4  ;;  %v4000_v22 = vpack.c.bf16 %v416_v0, %v416_v0  ;;  %v229_v23 = vld [vmem:[%s3845_s30 + $0x128] sm:$0xff]  ;;  %v4058_v62 = vpack.c.bf16 %v235_v57, %v235_v57  ;;  %v4060_v0 = vpack.c.bf16 %v234_v60, %v234_v60  ;;  %v426_v12 = vld [vmem:[%s3845_s30 + $0x159] sm:$0xff] }
  0x31   : > { %v4015_v27 = vpack.c.bf16 %v229_v23, %v229_v23  ;;  %394 = vst.msk [vmem:[#allocation2 + $0x74] sm:$0xf] %vm364_vm0, %v4045_v50  ;;  %393 = vst.msk [vmem:[#allocation2 + $0x70] sm:$0xf] %vm364_vm0, %v4047_v51  ;;  %v3339_v6 = vpack.c.bf16 %v424_v4, %v424_v4  ;;  %v3338_v11 = vpack.c.bf16 %v423_v5, %v423_v5  ;;  %v425_v13 = vld [vmem:[%s3845_s30 + $0x151] sm:$0xff]  ;;  %v427_v23 = vld [vmem:[%s3845_s30 + $0x169] sm:$0xff] }
  0x32   : > { %396 = vst.msk [vmem:[#allocation2 + $0x7c] sm:$0xf] %vm364_vm0, %v4058_v62  ;;  %395 = vst.msk [vmem:[#allocation2 + $0x78] sm:$0xf] %vm364_vm0, %v4060_v0  ;;  %v3341_v17 = vpack.c.bf16 %v426_v12, %v426_v12  ;;  %v3340_v18 = vpack.c.bf16 %v425_v13, %v425_v13  ;;  %v428_v19 = vld [vmem:[%s3845_s30 + $0x171] sm:$0xff]  ;;  %v4080_v26 = vpack.c.bf16 %v427_v23, %v427_v23  ;;  %v656_v35 = vld [vmem:[%s3845_s30 + $0x1a] sm:$0xff] }
  0x33   : > { %390 = vst.msk [vmem:[#allocation2 + $0x64] sm:$0xf] %vm364_vm0, %v4015_v27  ;;  %v655_v30 = vld [vmem:[%s3845_s30 + $0xa] sm:$0xff]  ;;  %v659_v41 = vld [vmem:[%s3845_s30 + $0x3a] sm:$0xff]  ;;  %v658_v44 = vld [vmem:[%s3845_s30 + $0x32] sm:$0xff] }
  0x34   : > { %551 = vrot.lane.b32.xlu1 %v3325_v28, %s3755_s4  ;;  %549 = vrot.lane.b32.xlu0 %v3324_v33, %s3755_s4  ;;  %v4017_v28 = vpack.c.bf16 %v228_v24, %v228_v24  ;;  %v230_v33 = vld [vmem:[%s3845_s30 + $0x138] sm:$0xff]  ;;  %v4078_v24 = vpack.c.bf16 %v428_v19, %v428_v19  ;;  %v3345_v32 = vpack.c.bf16 %v655_v30, %v655_v30  ;;  %v662_v4 = vld [vmem:[%s3845_s30 + $0x62] sm:$0xff] }
  0x35   : > { %v4033_v38 = vpack.c.bf16 %v230_v33, %v230_v33  ;;  %v661_v52 = vld [vmem:[%s3845_s30 + $0x52] sm:$0xff]  ;;  %v664_v12 = vld [vmem:[%s3845_s30 + $0x7a] sm:$0xff] }
  0x36   : > { %389 = vst.msk [vmem:[#allocation2 + $0x60] sm:$0xf] %vm364_vm0, %v4017_v28  ;;  %v3351_v57 = vpack.c.bf16 %v661_v52, %v661_v52  ;;  %v666_v19 = vld [vmem:[%s3845_s30 + $0x92] sm:$0xff] }
  0x37   : > { %391 = vst.msk [vmem:[#allocation2 + $0x68] sm:$0xf] %vm364_vm0, %v4033_v38  ;;  %v3356_v30 = vpack.c.bf16 %v666_v19, %v666_v19  ;;  %v681_v19 = vld [vmem:[%s3845_s30 + $0x142] sm:$0xff] }
  0x38   : > { %555 = vrot.lane.b32.xlu1 %v3327_v46, %s3755_s4  ;;  %553 = vrot.lane.b32.xlu0 %v3899_v47, %s3755_s4  ;;  %v422_v46 = vld [vmem:[%s3845_s30 + $0x129] sm:$0xff] }
  0x39   : > { %v3337_v56 = vpack.c.bf16 %v422_v46, %v422_v46  ;;  %v3348_v46 = vpack.c.bf16 %v658_v44, %v658_v44  ;;  %v673_v44 = vld [vmem:[%s3845_s30 + $0xe2] sm:$0xff] }
  0x3c   : > { %559 = vrot.lane.b32.xlu1 %v3933_v63, %s3755_s4  ;;  %557 = vrot.lane.b32.xlu0 %v3951_v7, %s3755_s4 }
  0x40   : > { %563 = vrot.lane.b32.xlu1 %v4000_v22, %s3755_s4  ;;  %561 = vrot.lane.b32.xlu0 %v4012_v25, %s3755_s4 }
  0x44   : > { %567 = vrot.lane.b32.xlu1 %v3333_v31, %s3755_s4  ;;  %565 = vrot.lane.b32.xlu0 %v3332_v34, %s3755_s4  ;;  %v654_v31 = vld [vmem:[%s3845_s30 + $0x2] sm:$0xff] }
  0x45   : > { %v3344_v33 = vpack.c.bf16 %v654_v31, %v654_v31  ;;  %v657_v34 = vld [vmem:[%s3845_s30 + $0x22] sm:$0xff]  ;;  %v669_v31 = vld [vmem:[%s3845_s30 + $0xb2] sm:$0xff] }
  0x46   : > { %v3347_v39 = vpack.c.bf16 %v657_v34, %v657_v34 }
  0x48   : > { %571 = vrot.lane.b32.xlu1 %v3335_v40, %s3755_s4  ;;  %569 = vrot.lane.b32.xlu0 %v3334_v45, %s3755_s4  ;;  %v3346_v40 = vpack.c.bf16 %v656_v35, %v656_v35  ;;  %v3349_v45 = vpack.c.bf16 %v659_v41, %v659_v41  ;;  %v671_v35 = vld [vmem:[%s3845_s30 + $0xca] sm:$0xff] }
  0x4c   : > { %575 = vrot.lane.b32.xlu1 %v3337_v56, %s3755_s4  ;;  %573 = vrot.lane.b32.xlu0 %v3336_v61, %s3755_s4  ;;  %v660_v56 = vld [vmem:[%s3845_s30 + $0x4a] sm:$0xff] }
  0x4d   : > { %v3350_v60 = vpack.c.bf16 %v660_v56, %v660_v56  ;;  %v663_v61 = vld [vmem:[%s3845_s30 + $0x6a] sm:$0xff]  ;;  %v675_v56 = vld [vmem:[%s3845_s30 + $0xfa] sm:$0xff] }
  0x4e   : > { %v3353_v5 = vpack.c.bf16 %v663_v61, %v663_v61 }
  0x50   : > { %579 = vrot.lane.b32.xlu1 %v3339_v6, %s3755_s4  ;;  %577 = vrot.lane.b32.xlu0 %v3338_v11, %s3755_s4  ;;  %v3352_v6 = vpack.c.bf16 %v662_v4, %v662_v4  ;;  %v665_v11 = vld [vmem:[%s3845_s30 + $0x82] sm:$0xff]  ;;  %v677_v4 = vld [vmem:[%s3845_s30 + $0x112] sm:$0xff] }
  0x51   : > { %v3355_v13 = vpack.c.bf16 %v665_v11, %v665_v11 }
  0x54   : > { %583 = vrot.lane.b32.xlu1 %v3341_v17, %s3755_s4  ;;  %581 = vrot.lane.b32.xlu0 %v3340_v18, %s3755_s4  ;;  %v3354_v17 = vpack.c.bf16 %v664_v12, %v664_v12  ;;  %v667_v18 = vld [vmem:[%s3845_s30 + $0x9a] sm:$0xff]  ;;  %v679_v12 = vld [vmem:[%s3845_s30 + $0x12a] sm:$0xff] }
  0x55   : > { %v3357_v23 = vpack.c.bf16 %v667_v18, %v667_v18 }
  0x58   : > { %587 = vrot.lane.b32.xlu1 %v4078_v24, %s3755_s4  ;;  %585 = vrot.lane.b32.xlu0 %v4080_v26, %s3755_s4 }
  0x5c   : > { %784 = vrot.lane.b32.xlu1 %v3345_v32, %s3756_s5  ;;  %782 = vrot.lane.b32.xlu0 %v3344_v33, %s3756_s5  ;;  %v668_v32 = vld [vmem:[%s3845_s30 + $0xaa] sm:$0xff]  ;;  %v4116_v33 = vpack.c.bf16 %v669_v31, %v669_v31 }
  0x5d   : > { %v4118_v34 = vpack.c.bf16 %v668_v32, %v668_v32  ;;  %v683_v32 = vld [vmem:[%s3845_s30 + $0x15a] sm:$0xff] }
  0x60   : > { %788 = vrot.lane.b32.xlu1 %v3347_v39, %s3756_s5  ;;  %786 = vrot.lane.b32.xlu0 %v3346_v40, %s3756_s5  ;;  %v670_v39 = vld [vmem:[%s3845_s30 + $0xc2] sm:$0xff]  ;;  %v4126_v40 = vpack.c.bf16 %v671_v35, %v671_v35  ;;  %v682_v35 = vld [vmem:[%s3845_s30 + $0x152] sm:$0xff] }
  0x61   : > { %v4128_v41 = vpack.c.bf16 %v670_v39, %v670_v39 }
  0x64   : > { %792 = vrot.lane.b32.xlu1 %v3349_v45, %s3756_s5  ;;  %790 = vrot.lane.b32.xlu0 %v3348_v46, %s3756_s5  ;;  %v672_v45 = vld [vmem:[%s3845_s30 + $0xda] sm:$0xff]  ;;  %v4136_v46 = vpack.c.bf16 %v673_v44, %v673_v44 }
  0x65   : > { %v4138_v52 = vpack.c.bf16 %v672_v45, %v672_v45  ;;  %v4164_v45 = vpack.c.bf16 %v683_v32, %v683_v32 }
  0x68   : > { %796 = vrot.lane.b32.xlu1 %v3351_v57, %s3756_s5  ;;  %794 = vrot.lane.b32.xlu0 %v3350_v60, %s3756_s5  ;;  %v674_v57 = vld [vmem:[%s3845_s30 + $0xf2] sm:$0xff]  ;;  %v3365_v60 = vpack.c.bf16 %v675_v56, %v675_v56  ;;  %v4166_v56 = vpack.c.bf16 %v682_v35, %v682_v35 }
  0x69   : > { %v3364_v61 = vpack.c.bf16 %v674_v57, %v674_v57  ;;  %v685_v57 = vld [vmem:[%s3845_s30 + $0x172] sm:$0xff] }
  0x6c   : > { %800 = vrot.lane.b32.xlu1 %v3353_v5, %s3756_s5  ;;  %798 = vrot.lane.b32.xlu0 %v3352_v6, %s3756_s5  ;;  %v676_v5 = vld [vmem:[%s3845_s30 + $0x10a] sm:$0xff]  ;;  %v3367_v6 = vpack.c.bf16 %v677_v4, %v677_v4 }
  0x6d   : > { %v3366_v11 = vpack.c.bf16 %v676_v5, %v676_v5  ;;  %v4176_v5 = vpack.c.bf16 %v685_v57, %v685_v57 }
  0x70   : > { %804 = vrot.lane.b32.xlu1 %v3355_v13, %s3756_s5  ;;  %802 = vrot.lane.b32.xlu0 %v3354_v17, %s3756_s5  ;;  %v678_v13 = vld [vmem:[%s3845_s30 + $0x122] sm:$0xff]  ;;  %v3369_v17 = vpack.c.bf16 %v679_v12, %v679_v12 }
  0x71   : > { %v3368_v18 = vpack.c.bf16 %v678_v13, %v678_v13 }
  0x74   : > { %808 = vrot.lane.b32.xlu1 %v3357_v23, %s3756_s5  ;;  %806 = vrot.lane.b32.xlu0 %v3356_v30, %s3756_s5  ;;  %v680_v23 = vld [vmem:[%s3845_s30 + $0x13a] sm:$0xff]  ;;  %v3371_v30 = vpack.c.bf16 %v681_v19, %v681_v19 }
  0x75   : > { %v3370_v31 = vpack.c.bf16 %v680_v23, %v680_v23 }
  0x78   : > { %812 = vrot.lane.b32.xlu1 %v4116_v33, %s3756_s5  ;;  %810 = vrot.lane.b32.xlu0 %v4118_v34, %s3756_s5 }
  0x7c   : > { %816 = vrot.lane.b32.xlu1 %v4126_v40, %s3756_s5  ;;  %814 = vrot.lane.b32.xlu0 %v4128_v41, %s3756_s5 }
  0x80   : > { %820 = vrot.lane.b32.xlu1 %v4136_v46, %s3756_s5  ;;  %818 = vrot.lane.b32.xlu0 %v4138_v52, %s3756_s5 }
  0x84   : > { %824 = vrot.lane.b32.xlu1 %v3365_v60, %s3756_s5  ;;  %822 = vrot.lane.b32.xlu0 %v3364_v61, %s3756_s5  ;;  %v684_v60 = vld [vmem:[%s3845_s30 + $0x16a] sm:$0xff] }
  0x88   : > { %828 = vrot.lane.b32.xlu1 %v3367_v6, %s3756_s5  ;;  %826 = vrot.lane.b32.xlu0 %v3366_v11, %s3756_s5  ;;  %v4178_v6 = vpack.c.bf16 %v684_v60, %v684_v60 }
  0x8c   : > { %832 = vrot.lane.b32.xlu1 %v3369_v17, %s3756_s5  ;;  %830 = vrot.lane.b32.xlu0 %v3368_v18, %s3756_s5 }
  0x8e   : > { %v530_v39 = vpop.permute.xlu1 %529  ;;  %v526_v44 = vpop.permute.xlu0 %525 }
  0x8f   : > { %624 = vst.msk [vmem:[#allocation2 + $0x8] sm:$0xf] %vm621_vm1, %v530_v39  ;;  %622 = vst.msk [vmem:[#allocation2] sm:$0xf] %vm621_vm1, %v526_v44  ;;  %v2904_v44 = vld [vmem:[%s3845_s30 + $0x180] sm:$0xff] }
  0x90   : > { %836 = vrot.lane.b32.xlu1 %v3371_v30, %s3756_s5  ;;  %834 = vrot.lane.b32.xlu0 %v3370_v31, %s3756_s5 }
  0x92   : > { %v532_v61 = vpop.permute.xlu1 %531  ;;  %v528_v4 = vpop.permute.xlu0 %527 }
  0x93   : > { %625 = vst.msk [vmem:[#allocation2 + $0xc] sm:$0xf] %vm621_vm1, %v532_v61  ;;  %623 = vst.msk [vmem:[#allocation2 + $0x4] sm:$0xf] %vm621_vm1, %v528_v4 }
  0x94   : > { %840 = vrot.lane.b32.xlu1 %v4164_v45, %s3756_s5  ;;  %838 = vrot.lane.b32.xlu0 %v4166_v56, %s3756_s5 }
  0x96   : > { %v536_v11 = vpop.permute.xlu1 %535  ;;  %v534_v12 = vpop.permute.xlu0 %533 }
  0x97   : > { %627 = vst.msk [vmem:[#allocation2 + $0x14] sm:$0xf] %vm621_vm1, %v536_v11  ;;  %626 = vst.msk [vmem:[#allocation2 + $0x10] sm:$0xf] %vm621_vm1, %v534_v12 }
  0x98   : > { %844 = vrot.lane.b32.xlu1 %v4176_v5, %s3756_s5  ;;  %842 = vrot.lane.b32.xlu0 %v4178_v6, %s3756_s5 }
  0x9a   : > { %v540_v13 = vpop.permute.xlu1 %539  ;;  %v538_v17 = vpop.permute.xlu0 %537 }
  0x9b   : > { %629 = vst.msk [vmem:[#allocation2 + $0x1c] sm:$0xf] %vm621_vm1, %v540_v13  ;;  %628 = vst.msk [vmem:[#allocation2 + $0x18] sm:$0xf] %vm621_vm1, %v538_v17  ;;  %v3032_v17 = vld [vmem:[%s3845_s30 + $0x182] sm:$0xff] }
  0x9c   : > { %1042 = vrot.lane.b32.xlu1 %v3881_v36, %s3757_s6  ;;  %1040 = vrot.lane.b32.xlu0 %v3873_v29, %s3757_s6 }
  0x9e   : > { %v544_v18 = vpop.permute.xlu1 %543  ;;  %v542_v19 = vpop.permute.xlu0 %541 }
  0x9f   : > { %631 = vst.msk [vmem:[#allocation2 + $0x24] sm:$0xf] %vm621_vm1, %v544_v18  ;;  %630 = vst.msk [vmem:[#allocation2 + $0x20] sm:$0xf] %vm621_vm1, %v542_v19 }
  0xa0   : > { %1046 = vrot.lane.b32.xlu1 %v3893_v42, %s3757_s6  ;;  %1044 = vrot.lane.b32.xlu0 %v3895_v43, %s3757_s6 }
  0xa2   : > { %v548_v23 = vpop.permute.xlu1 %547  ;;  %v546_v30 = vpop.permute.xlu0 %545 }
  0xa3   : > { %633 = vst.msk [vmem:[#allocation2 + $0x2c] sm:$0xf] %vm621_vm1, %v548_v23  ;;  %632 = vst.msk [vmem:[#allocation2 + $0x28] sm:$0xf] %vm621_vm1, %v546_v30  ;;  %v4295_v23 = vpack.c.bf16 %v3032_v17, %v3032_v17 }
  0xa4   : > { %1050 = vrot.lane.b32.xlu1 %v3901_v48, %s3757_s6  ;;  %1048 = vrot.lane.b32.xlu0 %v3903_v49, %s3757_s6 }
  0xa6   : > { %v552_v29 = vpop.permute.xlu1 %551  ;;  %v550_v36 = vpop.permute.xlu0 %549 }
  0xa7   : > { %635 = vst.msk [vmem:[#allocation2 + $0x34] sm:$0xf] %vm621_vm1, %v552_v29  ;;  %634 = vst.msk [vmem:[#allocation2 + $0x30] sm:$0xf] %vm621_vm1, %v550_v36 }
  0xa8   : > { %1054 = vrot.lane.b32.xlu1 %v3914_v53, %s3757_s6  ;;  %1052 = vrot.lane.b32.xlu0 %v3916_v54, %s3757_s6 }
  0xaa   : > { %v556_v42 = vpop.permute.xlu1 %555  ;;  %v554_v43 = vpop.permute.xlu0 %553 }
  0xab   : > { %637 = vst.msk [vmem:[#allocation2 + $0x3c] sm:$0xf] %vm621_vm1, %v556_v42  ;;  %636 = vst.msk [vmem:[#allocation2 + $0x38] sm:$0xf] %vm621_vm1, %v554_v43  ;;  %v3096_v42 = vld [vmem:[%s3845_s30 + $0x198] sm:$0xff] }
  0xac   : > { %1058 = vrot.lane.b32.xlu1 %v3918_v55, %s3757_s6  ;;  %1056 = vrot.lane.b32.xlu0 %v3926_v58, %s3757_s6 }
  0xae   : > { %v560_v48 = vpop.permute.xlu1 %559  ;;  %v558_v49 = vpop.permute.xlu0 %557 }
  0xaf   : > { %639 = vst.msk [vmem:[#allocation2 + $0x44] sm:$0xf] %vm621_vm1, %v560_v48  ;;  %638 = vst.msk [vmem:[#allocation2 + $0x40] sm:$0xf] %vm621_vm1, %v558_v49  ;;  %v3502_v49 = vpack.c.bf16 %v3096_v42, %v3096_v42 }
  0xb0   : > { %1062 = vrot.lane.b32.xlu1 %v3928_v59, %s3757_s6  ;;  %1060 = vrot.lane.b32.xlu0 %v3942_v1, %s3757_s6 }
  0xb2   : > { %v564_v53 = vpop.permute.xlu1 %563  ;;  %v562_v54 = vpop.permute.xlu0 %561 }
  0xb3   : > { %641 = vst.msk [vmem:[#allocation2 + $0x4c] sm:$0xf] %vm621_vm1, %v564_v53  ;;  %640 = vst.msk [vmem:[#allocation2 + $0x48] sm:$0xf] %vm621_vm1, %v562_v54  ;;  %v3097_v53 = vld [vmem:[%s3845_s30 + $0x1a0] sm:$0xff] }
  0xb4   : > { %1066 = vrot.lane.b32.xlu1 %v3944_v2, %s3757_s6  ;;  %1064 = vrot.lane.b32.xlu0 %v3946_v3, %s3757_s6 }
  0xb6   : > { %v568_v55 = vpop.permute.xlu1 %567  ;;  %v566_v58 = vpop.permute.xlu0 %565 }
  0xb7   : > { %643 = vst.msk [vmem:[#allocation2 + $0x54] sm:$0xf] %vm621_vm1, %v568_v55  ;;  %642 = vst.msk [vmem:[#allocation2 + $0x50] sm:$0xf] %vm621_vm1, %v566_v58  ;;  %v3503_v58 = vpack.c.bf16 %v3097_v53, %v3097_v53  ;;  %v2949_v53 = vld [vmem:[%s3845_s30 + $0x99] sm:$0xff] }
  0xb8   : > { %1070 = vrot.lane.b32.xlu1 %v3957_v8, %s3757_s6  ;;  %1068 = vrot.lane.b32.xlu0 %v3959_v9, %s3757_s6 }
  0xba   : > { %v572_v59 = vpop.permute.xlu1 %571  ;;  %v570_v1 = vpop.permute.xlu0 %569 }
  0xbb   : > { %645 = vst.msk [vmem:[#allocation2 + $0x5c] sm:$0xf] %vm621_vm1, %v572_v59  ;;  %644 = vst.msk [vmem:[#allocation2 + $0x58] sm:$0xf] %vm621_vm1, %v570_v1  ;;  %v3160_v59 = vld [vmem:[%s3845_s30 + $0x199] sm:$0xff] }
  0xbc   : > { %1074 = vrot.lane.b32.xlu1 %v3961_v10, %s3757_s6  ;;  %1072 = vrot.lane.b32.xlu0 %v3975_v14, %s3757_s6 }
  0xbe   : > { %v576_v31 = vpop.permute.xlu1 %575  ;;  %v574_v32 = vpop.permute.xlu0 %573 }
  0xbf   : > { %647 = vst.msk [vmem:[#allocation2 + $0x64] sm:$0xf] %vm621_vm1, %v576_v31  ;;  %646 = vst.msk [vmem:[#allocation2 + $0x60] sm:$0xf] %vm621_vm1, %v574_v32  ;;  %v3534_v31 = vpack.c.bf16 %v3160_v59, %v3160_v59  ;;  %v3161_v32 = vld [vmem:[%s3845_s30 + $0x1a1] sm:$0xff]  ;;  %v2965_v59 = vld [vmem:[%s3845_s30 + $0x159] sm:$0xff] }
  0xc0   : > { %1078 = vrot.lane.b32.xlu1 %v3977_v15, %s3757_s6  ;;  %1076 = vrot.lane.b32.xlu0 %v3979_v16, %s3757_s6  ;;  %v4259_v16 = vpack.c.bf16 %v2904_v44, %v2904_v44  ;;  %v3224_v44 = vld [vmem:[%s3845_s30 + $0x19a] sm:$0xff] }
  0xc2   : > { %v580_v35 = vpop.permute.xlu1 %579  ;;  %v578_v39 = vpop.permute.xlu0 %577 }
  0xc3   : > { %649 = vst.msk [vmem:[#allocation2 + $0x6c] sm:$0xf] %vm621_vm1, %v580_v35  ;;  %648 = vst.msk [vmem:[#allocation2 + $0x68] sm:$0xf] %vm621_vm1, %v578_v39  ;;  %v3535_v39 = vpack.c.bf16 %v3161_v32, %v3161_v32  ;;  %v4442_v32 = vpack.c.bf16 %v2965_v59, %v2965_v59 }
  0xc4   : > { %1082 = vrot.lane.b32.xlu1 %v3990_v20, %s3757_s6  ;;  %1080 = vrot.lane.b32.xlu0 %v3992_v21, %s3757_s6  ;;  %v2905_v20 = vld [vmem:[%s3845_s30 + $0x188] sm:$0xff] }
  0xc5   : > { %v4268_v21 = vpack.c.bf16 %v2905_v20, %v2905_v20  ;;  %v3225_v20 = vld [vmem:[%s3845_s30 + $0x1a2] sm:$0xff] }
  0xc6   : > { %v584_v57 = vpop.permute.xlu1 %583  ;;  %v582_v15 = vpop.permute.xlu0 %581 }
  0xc7   : > { %651 = vst.msk [vmem:[#allocation2 + $0x74] sm:$0xf] %vm621_vm1, %v584_v57  ;;  %650 = vst.msk [vmem:[#allocation2 + $0x70] sm:$0xf] %vm621_vm1, %v582_v15  ;;  %v3566_v15 = vpack.c.bf16 %v3224_v44, %v3224_v44 }
  0xc8   : > { %1086 = vrot.lane.b32.xlu1 %v4015_v27, %s3757_s6  ;;  %1084 = vrot.lane.b32.xlu0 %v4017_v28, %s3757_s6  ;;  %v2968_v27 = vld [vmem:[%s3845_s30 + $0x181] sm:$0xff] }
  0xc9   : > { %v4277_v11 = vpack.c.bf16 %v2968_v27, %v2968_v27 }
  0xca   : > { %v588_v60 = vpop.permute.xlu1 %587  ;;  %v586_v61 = vpop.permute.xlu0 %585 }
  0xcb   : > { %653 = vst.msk [vmem:[#allocation2 + $0x7c] sm:$0xf] %vm621_vm1, %v588_v60  ;;  %652 = vst.msk [vmem:[#allocation2 + $0x78] sm:$0xf] %vm621_vm1, %v586_v61 }
  0xcc   : > { %1100 = vrot.lane.b32.xlu1 %v4259_v16, %s3757_s6  ;;  %1088 = vrot.lane.b32.xlu0 %v4033_v38, %s3757_s6  ;;  %v2969_v38 = vld [vmem:[%s3845_s30 + $0x189] sm:$0xff] }
  0xce   : > { %v785_v28 = vpop.permute.xlu1 %784  ;;  %v783_v4 = vpop.permute.xlu0 %782 }
  0xcf   : > { %880 = vst.msk [vmem:[#allocation2 + $0x4] sm:$0xf] %vm878_vm2, %v785_v28  ;;  %879 = vst.msk [vmem:[#allocation2] sm:$0xf] %vm878_vm2, %v783_v4 }
  0xd0   : > { %1325 = vrot.lane.b32.xlu1 %v3951_v7, %s3758_s7  ;;  %1102 = vrot.lane.b32.xlu0 %v4268_v21, %s3757_s6  ;;  %v4286_v7 = vpack.c.bf16 %v2969_v38, %v2969_v38 }
  0xd2   : > { %v789_v12 = vpop.permute.xlu1 %788  ;;  %v787_v13 = vpop.permute.xlu0 %786 }
  0xd3   : > { %882 = vst.msk [vmem:[#allocation2 + $0xc] sm:$0xf] %vm878_vm2, %v789_v12  ;;  %881 = vst.msk [vmem:[#allocation2 + $0x8] sm:$0xf] %vm878_vm2, %v787_v13 }
  0xd4   : > { %1357 = vrot.lane.b32.xlu1 %v4277_v11, %s3758_s7  ;;  %1327 = vrot.lane.b32.xlu0 %v3933_v63, %s3758_s7  ;;  %v3033_v63 = vld [vmem:[%s3845_s30 + $0x18a] sm:$0xff] }
  0xd5   : > { %v4304_v36 = vpack.c.bf16 %v3033_v63, %v3033_v63 }
  0xd6   : > { %v793_v18 = vpop.permute.xlu1 %792  ;;  %v791_v19 = vpop.permute.xlu0 %790 }
  0xd7   : > { %884 = vst.msk [vmem:[#allocation2 + $0x14] sm:$0xf] %vm878_vm2, %v793_v18  ;;  %883 = vst.msk [vmem:[#allocation2 + $0x10] sm:$0xf] %vm878_vm2, %v791_v19 }
  0xd8   : > { %1582 = vrot.lane.b32.xlu1 %v4128_v41, %s3759_s8  ;;  %1359 = vrot.lane.b32.xlu0 %v4286_v7, %s3758_s7 }
  0xda   : > { %v797_v30 = vpop.permute.xlu1 %796  ;;  %v795_v29 = vpop.permute.xlu0 %794 }
  0xdb   : > { %886 = vst.msk [vmem:[#allocation2 + $0x1c] sm:$0xf] %vm878_vm2, %v797_v30  ;;  %885 = vst.msk [vmem:[#allocation2 + $0x18] sm:$0xf] %vm878_vm2, %v795_v29  ;;  %v3143_v30 = vld [vmem:[%s3845_s30 + $0xc9] sm:$0xff] }
  0xdc   : > { %1614 = vrot.lane.b32.xlu1 %v4295_v23, %s3759_s8  ;;  %1584 = vrot.lane.b32.xlu0 %v4126_v40, %s3759_s8 }
  0xde   : > { %v801_v43 = vpop.permute.xlu1 %800  ;;  %v799_v48 = vpop.permute.xlu0 %798 }
  0xdf   : > { %888 = vst.msk [vmem:[#allocation2 + $0x24] sm:$0xf] %vm878_vm2, %v801_v43  ;;  %887 = vst.msk [vmem:[#allocation2 + $0x20] sm:$0xf] %vm878_vm2, %v799_v48 }
  0xe0   : > { %1840 = vrot.lane.b32.xlu1 %v3975_v14, %s3760_s9  ;;  %1616 = vrot.lane.b32.xlu0 %v4304_v36, %s3759_s8 }
  0xe2   : > { %v805_v54 = vpop.permute.xlu1 %804  ;;  %v803_v55 = vpop.permute.xlu0 %802 }
  0xe3   : > { %890 = vst.msk [vmem:[#allocation2 + $0x2c] sm:$0xf] %vm878_vm2, %v805_v54  ;;  %889 = vst.msk [vmem:[#allocation2 + $0x28] sm:$0xf] %vm878_vm2, %v803_v55 }
  0xe4   : > { %1872 = vrot.lane.b32.xlu1 %v3502_v49, %s3760_s9  ;;  %1842 = vrot.lane.b32.xlu0 %v3961_v10, %s3760_s9 }
  0xe6   : > { %v809_v14 = vpop.permute.xlu1 %808  ;;  %v807_v1 = vpop.permute.xlu0 %806 }
  0xe7   : > { %892 = vst.msk [vmem:[#allocation2 + $0x34] sm:$0xf] %vm878_vm2, %v809_v14  ;;  %891 = vst.msk [vmem:[#allocation2 + $0x30] sm:$0xf] %vm878_vm2, %v807_v1 }
  0xe8   : > { %2097 = vrot.lane.b32.xlu1 %v4012_v25, %s3761_s10  ;;  %1874 = vrot.lane.b32.xlu0 %v3503_v58, %s3760_s9  ;;  %v3012_v58 = vld [vmem:[%s3845_s30 + $0x92] sm:$0xff] }
  0xea   : > { %v813_v35 = vpop.permute.xlu1 %812  ;;  %v811_v10 = vpop.permute.xlu0 %810 }
  0xeb   : > { %894 = vst.msk [vmem:[#allocation2 + $0x3c] sm:$0xf] %vm878_vm2, %v813_v35  ;;  %893 = vst.msk [vmem:[#allocation2 + $0x38] sm:$0xf] %vm878_vm2, %v811_v10  ;;  %v3013_v35 = vld [vmem:[%s3845_s30 + $0x9a] sm:$0xff] }
  0xec   : > { %2129 = vrot.lane.b32.xlu1 %v3534_v31, %s3761_s10  ;;  %2099 = vrot.lane.b32.xlu0 %v4000_v22, %s3761_s10  ;;  %v3567_v22 = vpack.c.bf16 %v3225_v20, %v3225_v20  ;;  %v4440_v31 = vpack.c.bf16 %v3012_v58, %v3012_v58  ;;  %v4451_v44 = vpack.c.bf16 %v3013_v35, %v3013_v35  ;;  %v3074_v35 = vld [vmem:[%s3845_s30 + $0x90] sm:$0xff] }
  0xee   : > { %v817_v57 = vpop.permute.xlu1 %816  ;;  %v815_v25 = vpop.permute.xlu0 %814 }
  0xef   : > { %896 = vst.msk [vmem:[#allocation2 + $0x44] sm:$0xf] %vm878_vm2, %v817_v57  ;;  %895 = vst.msk [vmem:[#allocation2 + $0x40] sm:$0xf] %vm878_vm2, %v815_v25 }
  0xf0   : > { %2354 = vrot.lane.b32.xlu1 %v4138_v52, %s3762_s11  ;;  %2131 = vrot.lane.b32.xlu0 %v3535_v39, %s3761_s10  ;;  %v2951_v52 = vld [vmem:[%s3845_s30 + $0xb1] sm:$0xff] }
  0xf2   : > { %v821_v60 = vpop.permute.xlu1 %820  ;;  %v819_v61 = vpop.permute.xlu0 %818 }
  0xf3   : > { %898 = vst.msk [vmem:[#allocation2 + $0x4c] sm:$0xf] %vm878_vm2, %v821_v60  ;;  %897 = vst.msk [vmem:[#allocation2 + $0x48] sm:$0xf] %vm878_vm2, %v819_v61  ;;  %v3140_v60 = vld [vmem:[%s3845_s30 + $0xa9] sm:$0xff] }
  0xf4   : > { %2386 = vrot.lane.b32.xlu1 %v3566_v15, %s3762_s11  ;;  %2356 = vrot.lane.b32.xlu0 %v4136_v46, %s3762_s11  ;;  %v4355_v46 = vpack.c.bf16 %v2951_v52, %v2951_v52  ;;  %v3157_v52 = vld [vmem:[%s3845_s30 + $0x171] sm:$0xff] }
  0xf6   : > { %v825_v27 = vpop.permute.xlu1 %824  ;;  %v823_v28 = vpop.permute.xlu0 %822 }
  0xf7   : > { %900 = vst.msk [vmem:[#allocation2 + $0x54] sm:$0xf] %vm878_vm2, %v825_v27  ;;  %899 = vst.msk [vmem:[#allocation2 + $0x50] sm:$0xf] %vm878_vm2, %v823_v28 }
  0xf8   : > { %1096 = vrot.lane.b32.xlu1 %v4060_v0, %s3757_s6  ;;  %2388 = vrot.lane.b32.xlu0 %v3567_v22, %s3762_s11  ;;  %v3514_v22 = vpack.c.bf16 %v3140_v60, %v3140_v60 }
  0xfa   : > { %v829_v4 = vpop.permute.xlu1 %828  ;;  %v827_v38 = vpop.permute.xlu0 %826 }
  0xfb   : > { %902 = vst.msk [vmem:[#allocation2 + $0x5c] sm:$0xf] %vm878_vm2, %v829_v4  ;;  %901 = vst.msk [vmem:[#allocation2 + $0x58] sm:$0xf] %vm878_vm2, %v827_v38 }
  0xfc   : > { %1321 = vrot.lane.b32.xlu1 %v3899_v47, %s3758_s7  ;;  %1098 = vrot.lane.b32.xlu0 %v4058_v62, %s3757_s6 }
  0xfe   : > { %v833_v12 = vpop.permute.xlu1 %832  ;;  %v831_v13 = vpop.permute.xlu0 %830 }
  0xff   : > { %904 = vst.msk [vmem:[#allocation2 + $0x64] sm:$0xf] %vm878_vm2, %v833_v12  ;;  %903 = vst.msk [vmem:[#allocation2 + $0x60] sm:$0xf] %vm878_vm2, %v831_v13  ;;  %v3531_v12 = vpack.c.bf16 %v3157_v52, %v3157_v52  ;;  %v3220_v13 = vld [vmem:[%s3845_s30 + $0x16a] sm:$0xff] }
 0x100   : > { %1353 = vrot.lane.b32.xlu1 %v4080_v26, %s3758_s7  ;;  %1323 = vrot.lane.b32.xlu0 %v4355_v46, %s3758_s7  ;;  %v2945_v52 = vld [vmem:[%s3845_s30 + $0x69] sm:$0xff] }
 0x102   : > { %v837_v17 = vpop.permute.xlu1 %836  ;;  %v835_v18 = vpop.permute.xlu0 %834 }
 0x103   : > { %906 = vst.msk [vmem:[#allocation2 + $0x6c] sm:$0xf] %vm878_vm2, %v837_v17  ;;  %905 = vst.msk [vmem:[#allocation2 + $0x68] sm:$0xf] %vm878_vm2, %v835_v18 }
 0x104   : > { %1578 = vrot.lane.b32.xlu1 %v4118_v34, %s3759_s8  ;;  %1355 = vrot.lane.b32.xlu0 %v4078_v24, %s3758_s7  ;;  %v3142_v24 = vld [vmem:[%s3845_s30 + $0xc1] sm:$0xff] }
 0x106   : > { %v841_v47 = vpop.permute.xlu1 %840  ;;  %v839_v19 = vpop.permute.xlu0 %838 }
 0x107   : > { %908 = vst.msk [vmem:[#allocation2 + $0x74] sm:$0xf] %vm878_vm2, %v841_v47  ;;  %907 = vst.msk [vmem:[#allocation2 + $0x70] sm:$0xf] %vm878_vm2, %v839_v19  ;;  %v3562_v47 = vpack.c.bf16 %v3220_v13, %v3220_v13  ;;  %v2960_v13 = vld [vmem:[%s3845_s30 + $0x121] sm:$0xff] }
 0x108   : > { %1610 = vrot.lane.b32.xlu1 %v4178_v6, %s3759_s8  ;;  %1580 = vrot.lane.b32.xlu0 %v4116_v33, %s3759_s8  ;;  %v3516_v33 = vpack.c.bf16 %v3142_v24, %v3142_v24 }
 0x10a   : > { %v845_v26 = vpop.permute.xlu1 %844  ;;  %v843_v63 = vpop.permute.xlu0 %842 }
 0x10b   : > { %910 = vst.msk [vmem:[#allocation2 + $0x7c] sm:$0xf] %vm878_vm2, %v845_v26  ;;  %909 = vst.msk [vmem:[#allocation2 + $0x78] sm:$0xf] %vm878_vm2, %v843_v63 }
 0x10c   : > { %1836 = vrot.lane.b32.xlu1 %v3959_v9, %s3760_s9  ;;  %1612 = vrot.lane.b32.xlu0 %v4176_v5, %s3759_s8  ;;  %v3517_v5 = vpack.c.bf16 %v3143_v30, %v3143_v30 }
 0x10e   : > { %v1043_v34 = vpop.permute.xlu1 %1042  ;;  %v1041_v6 = vpop.permute.xlu0 %1040 }
 0x10f   : > { %1138 = vst.msk [vmem:[#allocation2 + $0x4] sm:$0xf] %vm1136_vm3, %v1043_v34  ;;  %1137 = vst.msk [vmem:[#allocation2] sm:$0xf] %vm1136_vm3, %v1041_v6  ;;  %v2947_v34 = vld [vmem:[%s3845_s30 + $0x81] sm:$0xff]  ;;  %v2946_v6 = vld [vmem:[%s3845_s30 + $0x79] sm:$0xff] }
 0x110   : > { %1868 = vrot.lane.b32.xlu1 %v4259_v16, %s3760_s9  ;;  %1838 = vrot.lane.b32.xlu0 %v3957_v8, %s3760_s9 }
 0x112   : > { %v1047_v9 = vpop.permute.xlu1 %1046  ;;  %v1045_v29 = vpop.permute.xlu0 %1044 }
 0x113   : > { %1140 = vst.msk [vmem:[#allocation2 + $0xc] sm:$0xf] %vm1136_vm3, %v1047_v9  ;;  %1139 = vst.msk [vmem:[#allocation2 + $0x8] sm:$0xf] %vm1136_vm3, %v1045_v29  ;;  %v4503_v9 = vpack.c.bf16 %v2947_v34, %v2947_v34  ;;  %v4505_v29 = vpack.c.bf16 %v2946_v6, %v2946_v6  ;;  %v3025_v6 = vld [vmem:[%s3845_s30 + $0x12a] sm:$0xff] }
 0x114   : > { %2093 = vrot.lane.b32.xlu1 %v3516_v33, %s3761_s10  ;;  %1870 = vrot.lane.b32.xlu0 %v4268_v21, %s3760_s9 }
 0x116   : > { %v1051_v42 = vpop.permute.xlu1 %1050  ;;  %v1049_v43 = vpop.permute.xlu0 %1048 }
 0x117   : > { %1142 = vst.msk [vmem:[#allocation2 + $0x14] sm:$0xf] %vm1136_vm3, %v1051_v42  ;;  %1141 = vst.msk [vmem:[#allocation2 + $0x10] sm:$0xf] %vm1136_vm3, %v1049_v43  ;;  %v2962_v42 = vld [vmem:[%s3845_s30 + $0x139] sm:$0xff] }
 0x118   : > { %2125 = vrot.lane.b32.xlu1 %v4277_v11, %s3761_s10  ;;  %2095 = vrot.lane.b32.xlu0 %v3517_v5, %s3761_s10  ;;  %v2948_v11 = vld [vmem:[%s3845_s30 + $0x91] sm:$0xff]  ;;  %v2963_v5 = vld [vmem:[%s3845_s30 + $0x141] sm:$0xff] }
 0x11a   : > { %v1055_v8 = vpop.permute.xlu1 %1054  ;;  %v1053_v16 = vpop.permute.xlu0 %1052 }
 0x11b   : > { %1144 = vst.msk [vmem:[#allocation2 + $0x1c] sm:$0xf] %vm1136_vm3, %v1055_v8  ;;  %1143 = vst.msk [vmem:[#allocation2 + $0x18] sm:$0xf] %vm1136_vm3, %v1053_v16  ;;  %v4517_v16 = vpack.c.bf16 %v2962_v42, %v2962_v42  ;;  %v4625_v42 = vpack.c.bf16 %v3025_v6, %v3025_v6 }
 0x11c   : > { %2350 = vrot.lane.b32.xlu1 %v4128_v41, %s3762_s11  ;;  %2127 = vrot.lane.b32.xlu0 %v4286_v7, %s3761_s10  ;;  %v4418_v7 = vpack.c.bf16 %v2948_v11, %v2948_v11 }
 0x11e   : > { %v1059_v21 = vpop.permute.xlu1 %1058  ;;  %v1057_v48 = vpop.permute.xlu0 %1056 }
 0x11f   : > { %1146 = vst.msk [vmem:[#allocation2 + $0x24] sm:$0xf] %vm1136_vm3, %v1059_v21  ;;  %1145 = vst.msk [vmem:[#allocation2 + $0x20] sm:$0xf] %vm1136_vm3, %v1057_v48  ;;  %v3011_v21 = vld [vmem:[%s3845_s30 + $0x82] sm:$0xff]  ;;  %v3010_v48 = vld [vmem:[%s3845_s30 + $0x7a] sm:$0xff] }
 0x120   : > { %2382 = vrot.lane.b32.xlu1 %v4295_v23, %s3762_s11  ;;  %2352 = vrot.lane.b32.xlu0 %v4126_v40, %s3762_s11  ;;  %v2964_v23 = vld [vmem:[%s3845_s30 + $0x151] sm:$0xff] }
 0x121   : > { %v4428_v55 = vpack.c.bf16 %v2964_v23, %v2964_v23  ;;  %v4529_v23 = vpack.c.bf16 %v3010_v48, %v3010_v48 }
 0x122   : > { %v1063_v49 = vpop.permute.xlu1 %1062  ;;  %v1061_v41 = vpop.permute.xlu0 %1060 }
 0x123   : > { %1148 = vst.msk [vmem:[#allocation2 + $0x2c] sm:$0xf] %vm1136_vm3, %v1063_v49  ;;  %1147 = vst.msk [vmem:[#allocation2 + $0x28] sm:$0xf] %vm1136_vm3, %v1061_v41  ;;  %v4527_v41 = vpack.c.bf16 %v3011_v21, %v3011_v21  ;;  %v3072_v21 = vld [vmem:[%s3845_s30 + $0x78] sm:$0xff] }
 0x124   : > { %1092 = vrot.lane.b32.xlu1 %v4047_v51, %s3757_s6  ;;  %2384 = vrot.lane.b32.xlu0 %v4304_v36, %s3762_s11  ;;  %v4430_v36 = vpack.c.bf16 %v2949_v53, %v2949_v53  ;;  %v3027_v53 = vld [vmem:[%s3845_s30 + $0x142] sm:$0xff] }
 0x125   : > { %v4539_v59 = vpack.c.bf16 %v3027_v53, %v3027_v53  ;;  %v3478_v53 = vpack.c.bf16 %v3072_v21, %v3072_v21 }
 0x126   : > { %v1067_v40 = vpop.permute.xlu1 %1066  ;;  %v1065_v54 = vpop.permute.xlu0 %1064 }
 0x127   : > { %1150 = vst.msk [vmem:[#allocation2 + $0x34] sm:$0xf] %vm1136_vm3, %v1067_v40  ;;  %1149 = vst.msk [vmem:[#allocation2 + $0x30] sm:$0xf] %vm1136_vm3, %v1065_v54  ;;  %v3026_v40 = vld [vmem:[%s3845_s30 + $0x13a] sm:$0xff] }
 0x128   : > { %1317 = vrot.lane.b32.xlu1 %v4418_v7, %s3758_s7  ;;  %1094 = vrot.lane.b32.xlu0 %v4045_v50, %s3757_s6 }
 0x12a   : > { %v1071_v14 = vpop.permute.xlu1 %1070  ;;  %v1069_v1 = vpop.permute.xlu0 %1068 }
 0x12b   : > { %1152 = vst.msk [vmem:[#allocation2 + $0x3c] sm:$0xf] %vm1136_vm3, %v1071_v14  ;;  %1151 = vst.msk [vmem:[#allocation2 + $0x38] sm:$0xf] %vm1136_vm3, %v1069_v1  ;;  %v4541_v14 = vpack.c.bf16 %v3026_v40, %v3026_v40  ;;  %v3075_v1 = vld [vmem:[%s3845_s30 + $0x98] sm:$0xff]  ;;  %v3089_v40 = vld [vmem:[%s3845_s30 + $0x140] sm:$0xff] }
 0x12c   : > { %1349 = vrot.lane.b32.xlu1 %v4428_v55, %s3758_s7  ;;  %1319 = vrot.lane.b32.xlu0 %v4430_v36, %s3758_s7 }
 0x12e   : > { %v1075_v10 = vpop.permute.xlu1 %1074  ;;  %v1073_v39 = vpop.permute.xlu0 %1072 }
 0x12f   : > { %1154 = vst.msk [vmem:[#allocation2 + $0x44] sm:$0xf] %vm1136_vm3, %v1075_v10  ;;  %1153 = vst.msk [vmem:[#allocation2 + $0x40] sm:$0xf] %vm1136_vm3, %v1073_v39 }
 0x130   : > { %1574 = vrot.lane.b32.xlu1 %v4440_v31, %s3759_s8  ;;  %1351 = vrot.lane.b32.xlu0 %v4442_v32, %s3758_s7 }
 0x132   : > { %v1079_v57 = vpop.permute.xlu1 %1078  ;;  %v1077_v25 = vpop.permute.xlu0 %1076 }
 0x133   : > { %1156 = vst.msk [vmem:[#allocation2 + $0x4c] sm:$0xf] %vm1136_vm3, %v1079_v57  ;;  %1155 = vst.msk [vmem:[#allocation2 + $0x48] sm:$0xf] %vm1136_vm3, %v1077_v25  ;;  %v3481_v57 = vpack.c.bf16 %v3075_v1, %v3075_v1  ;;  %v3480_v25 = vpack.c.bf16 %v3074_v35, %v3074_v35  ;;  %v3495_v35 = vpack.c.bf16 %v3089_v40, %v3089_v40 }
 0x134   : > { %1606 = vrot.lane.b32.xlu1 %v4166_v56, %s3759_s8  ;;  %1576 = vrot.lane.b32.xlu0 %v4451_v44, %s3759_s8 }
 0x136   : > { %v1083_v15 = vpop.permute.xlu1 %1082  ;;  %v1081_v20 = vpop.permute.xlu0 %1080 }
 0x137   : > { %1158 = vst.msk [vmem:[#allocation2 + $0x54] sm:$0xf] %vm1136_vm3, %v1083_v15  ;;  %1157 = vst.msk [vmem:[#allocation2 + $0x50] sm:$0xf] %vm1136_vm3, %v1081_v20 }
 0x138   : > { %1832 = vrot.lane.b32.xlu1 %v3946_v3, %s3760_s9  ;;  %1608 = vrot.lane.b32.xlu0 %v4164_v45, %s3759_s8  ;;  %v3156_v3 = vld [vmem:[%s3845_s30 + $0x169] sm:$0xff] }
 0x139   : > { %v3204_v45 = vld [vmem:[%s3845_s30 + $0xaa] sm:$0xff] }
 0x13a   : > { %v1087_v61 = vpop.permute.xlu1 %1086  ;;  %v1085_v56 = vpop.permute.xlu0 %1084  ;;  %v3546_v38 = vpack.c.bf16 %v3204_v45, %v3204_v45 }
 0x13b   : > { %1160 = vst.msk [vmem:[#allocation2 + $0x5c] sm:$0xf] %vm1136_vm3, %v1087_v61  ;;  %1159 = vst.msk [vmem:[#allocation2 + $0x58] sm:$0xf] %vm1136_vm3, %v1085_v56 }
 0x13c   : > { %1864 = vrot.lane.b32.xlu1 %v4060_v0, %s3760_s9  ;;  %1834 = vrot.lane.b32.xlu0 %v3944_v2, %s3760_s9  ;;  %v3530_v0 = vpack.c.bf16 %v3156_v3, %v3156_v3 }
 0x13e   : > { %v1101_v27 = vpop.permute.xlu1 %1100  ;;  %v1089_v28 = vpop.permute.xlu0 %1088 }
 0x13f   : > { %1167 = vst.msk [vmem:[#allocation2 + $0x78] sm:$0xf] %vm1136_vm3, %v1101_v27  ;;  %1161 = vst.msk [vmem:[#allocation2 + $0x60] sm:$0xf] %vm1136_vm3, %v1089_v28 }
 0x140   : > { %2089 = vrot.lane.b32.xlu1 %v3514_v22, %s3761_s10  ;;  %1866 = vrot.lane.b32.xlu0 %v4058_v62, %s3760_s9  ;;  %v3205_v62 = vld [vmem:[%s3845_s30 + $0xb2] sm:$0xff] }
 0x141   : > { %v3547_v19 = vpack.c.bf16 %v3205_v62, %v3205_v62 }
 0x142   : > { %v1326_v2 = vpop.permute.xlu1 %1325  ;;  %v1103_v4 = vpop.permute.xlu0 %1102 }
 0x143   : > { %1408 = vst.msk [vmem:[#allocation2 + $0x38] sm:$0xf] %vm1393_vm4, %v1326_v2  ;;  %v2944_v2 = vld [vmem:[%s3845_s30 + $0x61] sm:$0xff] }
 0x144   : > { %1168 = vst.msk [vmem:[#allocation2 + $0x7c] sm:$0xf] %vm1136_vm3, %v1103_v4  ;;  %2121 = vrot.lane.b32.xlu1 %v3530_v0, %s3761_s10  ;;  %2091 = vrot.lane.b32.xlu0 %v4355_v46, %s3761_s10  ;;  %v3221_v46 = vld [vmem:[%s3845_s30 + $0x172] sm:$0xff] }
 0x145   : > { %v3563_v24 = vpack.c.bf16 %v3221_v46, %v3221_v46  ;;  %v3008_v46 = vld [vmem:[%s3845_s30 + $0x62] sm:$0xff] }
 0x146   : > { %v1358_v17 = vpop.permute.xlu1 %1357  ;;  %v1328_v18 = vpop.permute.xlu0 %1327  ;;  %v4615_v34 = vpack.c.bf16 %v3008_v46, %v3008_v46 }
 0x147   : > { %1424 = vst.msk [vmem:[#allocation2 + $0x78] sm:$0xf] %vm1393_vm4, %v1358_v17  ;;  %1409 = vst.msk [vmem:[#allocation2 + $0x3c] sm:$0xf] %vm1393_vm4, %v1328_v18 }
 0x148   : > { %2346 = vrot.lane.b32.xlu1 %v3546_v38, %s3762_s11  ;;  %2123 = vrot.lane.b32.xlu0 %v3531_v12, %s3761_s10  ;;  %v2961_v12 = vld [vmem:[%s3845_s30 + $0x129] sm:$0xff] }
 0x149   : > { %v4601_v18 = vpack.c.bf16 %v2961_v12, %v2961_v12 }
 0x14a   : > { %v1583_v26 = vpop.permute.xlu1 %1582  ;;  %v1360_v63 = vpop.permute.xlu0 %1359 }
 0x14b   : > { %1665 = vst.msk [vmem:[#allocation2 + $0x38] sm:$0xf] %vm1650_vm5, %v1583_v26 }
 0x14c   : > { %1425 = vst.msk [vmem:[#allocation2 + $0x7c] sm:$0xf] %vm1393_vm4, %v1360_v63  ;;  %2378 = vrot.lane.b32.xlu1 %v3562_v47, %s3762_s11  ;;  %2348 = vrot.lane.b32.xlu0 %v3547_v19, %s3762_s11  ;;  %v4603_v47 = vpack.c.bf16 %v2960_v13, %v2960_v13  ;;  %v3009_v19 = vld [vmem:[%s3845_s30 + $0x6a] sm:$0xff] }
 0x14e   : > { %v1615_v33 = vpop.permute.xlu1 %1614  ;;  %v1585_v30 = vpop.permute.xlu0 %1584 }
 0x14f   : > { %1681 = vst.msk [vmem:[#allocation2 + $0x78] sm:$0xf] %vm1650_vm5, %v1615_v33  ;;  %1666 = vst.msk [vmem:[#allocation2 + $0x3c] sm:$0xf] %vm1650_vm5, %v1585_v30  ;;  %v3024_v33 = vld [vmem:[%s3845_s30 + $0x122] sm:$0xff] }
 0x150   : > { %1090 = vrot.lane.b32.xlu1 %v4031_v37, %s3757_s6  ;;  %2380 = vrot.lane.b32.xlu0 %v3563_v24, %s3762_s11  ;;  %v4515_v37 = vpack.c.bf16 %v2963_v5, %v2963_v5  ;;  %v4613_v24 = vpack.c.bf16 %v3009_v19, %v3009_v19  ;;  %v3070_v19 = vld [vmem:[%s3845_s30 + $0x60] sm:$0xff]  ;;  %s4988_s6 = scalar_lea.hbm %s5031_s3, %s3568_s28 }
 0x151   : > { %v3476_v6 = vpack.c.bf16 %v3070_v19, %v3070_v19 }
 0x152   : > { %v1841_v43 = vpop.permute.xlu1 %1840  ;;  %v1617_v8 = vpop.permute.xlu0 %1616 }
 0x153   : > { %1923 = vst.msk [vmem:[#allocation2 + $0x38] sm:$0xf] %vm1908_vm6, %v1841_v43  ;;  %v4627_v43 = vpack.c.bf16 %v3024_v33, %v3024_v33  ;;  %v3087_v33 = vld [vmem:[%s3845_s30 + $0x128] sm:$0xff] }
 0x154   : > { %1682 = vst.msk [vmem:[#allocation2 + $0x7c] sm:$0xf] %vm1650_vm5, %v1617_v8  ;;  %1315 = vrot.lane.b32.xlu1 %v4503_v9, %s3758_s7  ;;  %1313 = vrot.lane.b32.xlu0 %v4505_v29, %s3758_s7  ;;  %v3073_v8 = vld [vmem:[%s3845_s30 + $0x80] sm:$0xff]  ;;  %v3493_v21 = vpack.c.bf16 %v3087_v33, %v3087_v33 }
 0x156   : > { %v1873_v11 = vpop.permute.xlu1 %1872  ;;  %v1843_v49 = vpop.permute.xlu0 %1842 }
 0x157   : > { %1939 = vst.msk [vmem:[#allocation2 + $0x78] sm:$0xf] %vm1908_vm6, %v1873_v11  ;;  %1924 = vst.msk [vmem:[#allocation2 + $0x3c] sm:$0xf] %vm1908_vm6, %v1843_v49  ;;  %v3479_v49 = vpack.c.bf16 %v3073_v8, %v3073_v8 }
 0x158   : > { %1347 = vrot.lane.b32.xlu1 %v4515_v37, %s3758_s7  ;;  %1345 = vrot.lane.b32.xlu0 %v4517_v16, %s3758_s7 }
 0x15a   : > { %v2098_v54 = vpop.permute.xlu1 %2097  ;;  %v1875_v58 = vpop.permute.xlu0 %1874 }
 0x15b   : > { %2180 = vst.msk [vmem:[#allocation2 + $0x38] sm:$0xf] %vm2165_vm7, %v2098_v54  ;;  %v3088_v54 = vld [vmem:[%s3845_s30 + $0x138] sm:$0xff] }
 0x15c   : > { %1940 = vst.msk [vmem:[#allocation2 + $0x7c] sm:$0xf] %vm1908_vm6, %v1875_v58  ;;  %1572 = vrot.lane.b32.xlu1 %v4527_v41, %s3759_s8  ;;  %1570 = vrot.lane.b32.xlu0 %v4529_v23, %s3759_s8 }
 0x15e   : > { %v2130_v10 = vpop.permute.xlu1 %2129  ;;  %v2100_v39 = vpop.permute.xlu0 %2099 }
 0x15f   : > { %2196 = vst.msk [vmem:[#allocation2 + $0x78] sm:$0xf] %vm2165_vm7, %v2130_v10  ;;  %2181 = vst.msk [vmem:[#allocation2 + $0x3c] sm:$0xf] %vm2165_vm7, %v2100_v39  ;;  %v3494_v10 = vpack.c.bf16 %v3088_v54, %v3088_v54 }
 0x160   : > { %1604 = vrot.lane.b32.xlu1 %v4539_v59, %s3759_s8  ;;  %1602 = vrot.lane.b32.xlu0 %v4541_v14, %s3759_s8 }
 0x162   : > { %v2355_v15 = vpop.permute.xlu1 %2354  ;;  %v2132_v20 = vpop.permute.xlu0 %2131 }
 0x163   : > { %2437 = vst.msk [vmem:[#allocation2 + $0x38] sm:$0xf] %vm2422_vm8, %v2355_v15 }
 0x164   : > { %2197 = vst.msk [vmem:[#allocation2 + $0x7c] sm:$0xf] %vm2165_vm7, %v2132_v20  ;;  %1830 = vrot.lane.b32.xlu1 %v3481_v57, %s3760_s9  ;;  %1828 = vrot.lane.b32.xlu0 %v3480_v25, %s3760_s9 }
 0x166   : > { %v2387_v60 = vpop.permute.xlu1 %2386  ;;  %v2357_v61 = vpop.permute.xlu0 %2356 }
 0x167   : > { %2453 = vst.msk [vmem:[#allocation2 + $0x78] sm:$0xf] %vm2422_vm8, %v2387_v60  ;;  %2438 = vst.msk [vmem:[#allocation2 + $0x3c] sm:$0xf] %vm2422_vm8, %v2357_v61 }
 0x168   : > { %1862 = vrot.lane.b32.xlu1 %v4045_v50, %s3760_s9  ;;  %1860 = vrot.lane.b32.xlu0 %v4047_v51, %s3760_s9  ;;  %v3219_v51 = vld [vmem:[%s3845_s30 + $0x15a] sm:$0xff] }
 0x16a   : > { %v1097_v56 = vpop.permute.xlu1 %1096  ;;  %v2389_v22 = vpop.permute.xlu0 %2388 }
 0x16b   : > { %1165 = vst.msk [vmem:[#allocation2 + $0x70] sm:$0xf] %vm1136_vm3, %v1097_v56 }
 0x16c   : > { %2454 = vst.msk [vmem:[#allocation2 + $0x7c] sm:$0xf] %vm2422_vm8, %v2389_v22  ;;  %2087 = vrot.lane.b32.xlu1 %v4430_v36, %s3761_s10  ;;  %2085 = vrot.lane.b32.xlu0 %v4418_v7, %s3761_s10  ;;  %v3218_v36 = vld [vmem:[%s3845_s30 + $0x152] sm:$0xff] }
 0x16e   : > { %v1322_v3 = vpop.permute.xlu1 %1321  ;;  %v1099_v27 = vpop.permute.xlu0 %1098  ;;  %v3662_v50 = vld [vmem:[#allocation2 + $0x38] sm:$0xff]  }
 0x16f   : > { %1406 = vst.msk [vmem:[#allocation2 + $0x30] sm:$0xf] %vm1393_vm4, %v1322_v3  ;;  %v2600_v45 = vsel %vm2574_vm9, %v3662_v50, 0  ;;  %v2959_v50 = vld [vmem:[%s3845_s30 + $0x111] sm:$0xff] }
 0x170   : > { %1166 = vst.msk [vmem:[#allocation2 + $0x74] sm:$0xf] %vm1136_vm3, %v1099_v27  ;;  %2119 = vrot.lane.b32.xlu1 %v4442_v32, %s3761_s10  ;;  %2117 = vrot.lane.b32.xlu0 %v4428_v55, %s3761_s10  ;;  %v3561_v55 = vpack.c.bf16 %v3219_v51, %v3219_v51  ;;  %v3560_v32 = vpack.c.bf16 %v3218_v36, %v3218_v36  ;;  %v2958_v51 = vld [vmem:[%s3845_s30 + $0x109] sm:$0xff] }
 0x172   : > { %v1354_v28 = vpop.permute.xlu1 %1353  ;;  %v1324_v0 = vpop.permute.xlu0 %1323 }
 0x173   : > { %v3661_v7 = vld [vmem:[#allocation2 + $0x78] sm:$0xff]   ;;  %1422 = vst.msk [vmem:[#allocation2 + $0x70] sm:$0xf] %vm1393_vm4, %v1354_v28  ;;  %1407 = vst.msk [vmem:[#allocation2 + $0x34] sm:$0xf] %vm1393_vm4, %v1324_v0 }
 0x174   : > { %2344 = vrot.lane.b32.xlu1 %v4451_v44, %s3762_s11  ;;  %2342 = vrot.lane.b32.xlu0 %v4440_v31, %s3762_s11  ;;  %v4589_v31 = vpack.c.bf16 %v2945_v52, %v2945_v52  ;;  %v4591_v44 = vpack.c.bf16 %v2944_v2, %v2944_v2  ;;  %v3007_v0 = vld [vmem:[%s3845_s30 + $0x52] sm:$0xff] }
 0x175   : > { %3587 = vmatprep.subr.msk.bf16.mxu0 %vm2574_vm9, %v3661_v7  ;;  %v3006_v7 = vld [vmem:[%s3845_s30 + $0x4a] sm:$0xff]  ;;  %v3023_v2 = vld [vmem:[%s3845_s30 + $0x112] sm:$0xff] }
 0x176   : > { %v1579_v4 = vpop.permute.xlu1 %1578  ;;  %v1356_v38 = vpop.permute.xlu0 %1355  ;;  %3570 = vmatpush3.bf16.xpose.msra.mxu0 %v2600_v45  ;;  %v4699_v45 = vpack.c.bf16 %v3007_v0, %v3007_v0  ;;  %v4701_v52 = vpack.c.bf16 %v3006_v7, %v3006_v7  ;;  %v4711_v13 = vpack.c.bf16 %v3023_v2, %v3023_v2  ;;  %v3068_v0 = vld [vmem:[%s3845_s30 + $0x48] sm:$0xff] }
 0x177   : > { %1663 = vst.msk [vmem:[#allocation2 + $0x30] sm:$0xf] %vm1650_vm5, %v1579_v4  ;;  %v3022_v4 = vld [vmem:[%s3845_s30 + $0x10a] sm:$0xff]  ;;  %v3474_v2 = vpack.c.bf16 %v3068_v0, %v3068_v0 }
 0x178   : > { %1423 = vst.msk [vmem:[#allocation2 + $0x74] sm:$0xf] %vm1393_vm4, %v1356_v38  ;;  %2376 = vrot.lane.b32.xlu1 %v3561_v55, %s3762_s11  ;;  %2374 = vrot.lane.b32.xlu0 %v3560_v32, %s3762_s11 }
 0x17a   : > { %v1611_v62 = vpop.permute.xlu1 %1610  ;;  %v1581_v17 = vpop.permute.xlu0 %1580 }
 0x17b   : > { %1679 = vst.msk [vmem:[#allocation2 + $0x70] sm:$0xf] %vm1650_vm5, %v1611_v62  ;;  %1664 = vst.msk [vmem:[#allocation2 + $0x34] sm:$0xf] %vm1650_vm5, %v1581_v17  ;;  %v4713_v62 = vpack.c.bf16 %v3022_v4, %v3022_v4  ;;  %v3071_v17 = vld [vmem:[%s3845_s30 + $0x68] sm:$0xff]  ;;  %v3085_v4 = vld [vmem:[%s3845_s30 + $0x110] sm:$0xff] }
 0x17c   : > { %1311 = vrot.lane.b32.xlu1 %v4589_v31, %s3758_s7  ;;  %1309 = vrot.lane.b32.xlu0 %v4591_v44, %s3758_s7  ;;  %v3491_v19 = vpack.c.bf16 %v3085_v4, %v3085_v4 }
 0x17e   : > { %v1837_v26 = vpop.permute.xlu1 %1836  ;;  %v1613_v63 = vpop.permute.xlu0 %1612 }
 0x17f   : > { %1921 = vst.msk [vmem:[#allocation2 + $0x30] sm:$0xf] %vm1908_vm6, %v1837_v26 }
 0x180   : > { %1680 = vst.msk [vmem:[#allocation2 + $0x74] sm:$0xf] %vm1650_vm5, %v1613_v63  ;;  %1343 = vrot.lane.b32.xlu1 %v4601_v18, %s3758_s7  ;;  %1341 = vrot.lane.b32.xlu0 %v4603_v47, %s3758_s7  ;;  %v3477_v63 = vpack.c.bf16 %v3071_v17, %v3071_v17 }
 0x182   : > { %v1869_v30 = vpop.permute.xlu1 %1868  ;;  %v1839_v5 = vpop.permute.xlu0 %1838 }
 0x183   : > { %1937 = vst.msk [vmem:[#allocation2 + $0x70] sm:$0xf] %vm1908_vm6, %v1869_v30  ;;  %1922 = vst.msk [vmem:[#allocation2 + $0x34] sm:$0xf] %vm1908_vm6, %v1839_v5  ;;  %v3086_v30 = vld [vmem:[%s3845_s30 + $0x120] sm:$0xff] }
 0x184   : > { %1568 = vrot.lane.b32.xlu1 %v4613_v24, %s3759_s8  ;;  %1566 = vrot.lane.b32.xlu0 %v4615_v34, %s3759_s8 }
 0x186   : > { %v2094_v48 = vpop.permute.xlu1 %2093  ;;  %v1871_v11 = vpop.permute.xlu0 %1870 }
 0x187   : > { %2178 = vst.msk [vmem:[#allocation2 + $0x30] sm:$0xf] %vm2165_vm7, %v2094_v48  ;;  %v3492_v48 = vpack.c.bf16 %v3086_v30, %v3086_v30 }
 0x188   : > { %1938 = vst.msk [vmem:[#allocation2 + $0x74] sm:$0xf] %vm1908_vm6, %v1871_v11  ;;  %1600 = vrot.lane.b32.xlu1 %v4625_v42, %s3759_s8  ;;  %1598 = vrot.lane.b32.xlu0 %v4627_v43, %s3759_s8 }
 0x18a   : > { %v2126_v58 = vpop.permute.xlu1 %2125  ;;  %v2096_v1 = vpop.permute.xlu0 %2095 }
 0x18b   : > { %2194 = vst.msk [vmem:[#allocation2 + $0x70] sm:$0xf] %vm2165_vm7, %v2126_v58  ;;  %2179 = vst.msk [vmem:[#allocation2 + $0x34] sm:$0xf] %vm2165_vm7, %v2096_v1 }
 0x18c   : > { %1826 = vrot.lane.b32.xlu1 %v3479_v49, %s3760_s9  ;;  %1824 = vrot.lane.b32.xlu0 %v3478_v53, %s3760_s9 }
 0x18e   : > { %v2351_v39 = vpop.permute.xlu1 %2350  ;;  %v2128_v57 = vpop.permute.xlu0 %2127 }
 0x18f   : > { %2435 = vst.msk [vmem:[#allocation2 + $0x30] sm:$0xf] %vm2422_vm8, %v2351_v39  ;;  %v2957_v39 = vld [vmem:[%s3845_s30 + $0xf9] sm:$0xff] }
 0x190   : > { %2195 = vst.msk [vmem:[#allocation2 + $0x74] sm:$0xf] %vm2165_vm7, %v2128_v57  ;;  %1858 = vrot.lane.b32.xlu1 %v3495_v35, %s3760_s9  ;;  %1856 = vrot.lane.b32.xlu0 %v3494_v10, %s3760_s9  ;;  %v2956_v57 = vld [vmem:[%s3845_s30 + $0xf1] sm:$0xff] }
 0x192   : > { %v2383_v25 = vpop.permute.xlu1 %2382  ;;  %v2353_v15 = vpop.permute.xlu0 %2352 }
 0x193   : > { %2451 = vst.msk [vmem:[#allocation2 + $0x70] sm:$0xf] %vm2422_vm8, %v2383_v25  ;;  %2436 = vst.msk [vmem:[#allocation2 + $0x34] sm:$0xf] %vm2422_vm8, %v2353_v15 }
 0x194   : > { %2083 = vrot.lane.b32.xlu1 %v4503_v9, %s3761_s10  ;;  %2081 = vrot.lane.b32.xlu0 %v4505_v29, %s3761_s10  ;;  %v2943_v29 = vld [vmem:[%s3845_s30 + $0x51] sm:$0xff] }
 0x196   : > { %v1093_v20 = vpop.permute.xlu1 %1092  ;;  %v2385_v60 = vpop.permute.xlu0 %2384 }
 0x197   : > { %1163 = vst.msk [vmem:[#allocation2 + $0x68] sm:$0xf] %vm1136_vm3, %v1093_v20 }
 0x198   : > { %2452 = vst.msk [vmem:[#allocation2 + $0x74] sm:$0xf] %vm2422_vm8, %v2385_v60  ;;  %2115 = vrot.lane.b32.xlu1 %v4515_v37, %s3761_s10  ;;  %2113 = vrot.lane.b32.xlu0 %v4517_v16, %s3761_s10  ;;  %v2942_v37 = vld [vmem:[%s3845_s30 + $0x49] sm:$0xff] }
 0x19a   : > { %v1318_v61 = vpop.permute.xlu1 %1317  ;;  %v1095_v56 = vpop.permute.xlu0 %1094  ;;  %v3664_v9 = vld [vmem:[#allocation2 + $0x30] sm:$0xff]  }
 0x19b   : > { %1404 = vst.msk [vmem:[#allocation2 + $0x28] sm:$0xf] %vm1393_vm4, %v1318_v61  ;;  %v2597_v27 = vsel %vm2574_vm9, %v3664_v9, 0  ;;  %v3005_v61 = vld [vmem:[%s3845_s30 + $0x3a] sm:$0xff] }
 0x19c   : > { %1164 = vst.msk [vmem:[#allocation2 + $0x6c] sm:$0xf] %vm1136_vm3, %v1095_v56  ;;  %2340 = vrot.lane.b32.xlu1 %v4527_v41, %s3762_s11  ;;  %2338 = vrot.lane.b32.xlu0 %v4529_v23, %s3762_s11  ;;  %v4673_v41 = vpack.c.bf16 %v2943_v29, %v2943_v29  ;;  %v4675_v23 = vpack.c.bf16 %v2942_v37, %v2942_v37  ;;  %v3004_v56 = vld [vmem:[%s3845_s30 + $0x32] sm:$0xff] }
 0x19d   : > { %v4785_v37 = vpack.c.bf16 %v3005_v61, %v3005_v61  ;;  %v3066_v61 = vld [vmem:[%s3845_s30 + $0x30] sm:$0xff] }
 0x19e   : > { %v1350_v22 = vpop.permute.xlu1 %1349  ;;  %v1320_v3 = vpop.permute.xlu0 %1319 }
 0x19f   : > { %v3663_v16 = vld [vmem:[#allocation2 + $0x70] sm:$0xff]   ;;  %1420 = vst.msk [vmem:[#allocation2 + $0x68] sm:$0xf] %vm1393_vm4, %v1350_v22  ;;  %1405 = vst.msk [vmem:[#allocation2 + $0x2c] sm:$0xf] %vm1393_vm4, %v1320_v3  ;;  %v4787_v22 = vpack.c.bf16 %v3004_v56, %v3004_v56  ;;  %v3021_v3 = vld [vmem:[%s3845_s30 + $0xfa] sm:$0xff] }
 0x1a0   : > { %2372 = vrot.lane.b32.xlu1 %v4539_v59, %s3762_s11  ;;  %2370 = vrot.lane.b32.xlu0 %v4541_v14, %s3762_s11  ;;  %v4687_v59 = vpack.c.bf16 %v2959_v50, %v2959_v50  ;;  %v4689_v14 = vpack.c.bf16 %v2958_v51, %v2958_v51  ;;  %v4797_v51 = vpack.c.bf16 %v3021_v3, %v3021_v3 }
 0x1a1   : > { %3588 = vmatprep.subr.msk.bf16.mxu0 %vm2574_vm9, %v3663_v16  ;;  %v3020_v16 = vld [vmem:[%s3845_s30 + $0xf2] sm:$0xff]  ;;  %v3472_v3 = vpack.c.bf16 %v3066_v61, %v3066_v61 }
 0x1a2   : > { %v1575_v36 = vpop.permute.xlu1 %1574  ;;  %v1352_v28 = vpop.permute.xlu0 %1351  ;;  %3572 = vmatpush3.bf16.xpose.msra.mxu0 %v2597_v27 }
 0x1a3   : > { %1661 = vst.msk [vmem:[#allocation2 + $0x28] sm:$0xf] %vm1650_vm5, %v1575_v36  ;;  %v4799_v36 = vpack.c.bf16 %v3020_v16, %v3020_v16  ;;  %v3083_v16 = vld [vmem:[%s3845_s30 + $0xf8] sm:$0xff] }
 0x1a4   : > { %1421 = vst.msk [vmem:[#allocation2 + $0x6c] sm:$0xf] %vm1393_vm4, %v1352_v28  ;;  %1307 = vrot.lane.b32.xlu1 %v4673_v41, %s3758_s7  ;;  %1305 = vrot.lane.b32.xlu0 %v4675_v23, %s3758_s7  ;;  %v3069_v28 = vld [vmem:[%s3845_s30 + $0x50] sm:$0xff]  ;;  %v3489_v0 = vpack.c.bf16 %v3083_v16, %v3083_v16 }
 0x1a6   : > { %v1607_v55 = vpop.permute.xlu1 %1606  ;;  %v1577_v32 = vpop.permute.xlu0 %1576 }
 0x1a7   : > { %1677 = vst.msk [vmem:[#allocation2 + $0x68] sm:$0xf] %vm1650_vm5, %v1607_v55  ;;  %1662 = vst.msk [vmem:[#allocation2 + $0x2c] sm:$0xf] %vm1650_vm5, %v1577_v32  ;;  %v3475_v32 = vpack.c.bf16 %v3069_v28, %v3069_v28 }
 0x1a8   : > { %1339 = vrot.lane.b32.xlu1 %v4687_v59, %s3758_s7  ;;  %1337 = vrot.lane.b32.xlu0 %v4689_v14, %s3758_s7 }
 0x1aa   : > { %v1833_v38 = vpop.permute.xlu1 %1832  ;;  %v1609_v12 = vpop.permute.xlu0 %1608 }
 0x1ab   : > { %1919 = vst.msk [vmem:[#allocation2 + $0x28] sm:$0xf] %vm1908_vm6, %v1833_v38  ;;  %v3084_v38 = vld [vmem:[%s3845_s30 + $0x108] sm:$0xff] }
 0x1ac   : > { %1678 = vst.msk [vmem:[#allocation2 + $0x6c] sm:$0xf] %vm1650_vm5, %v1609_v12  ;;  %1564 = vrot.lane.b32.xlu1 %v4699_v45, %s3759_s8  ;;  %1562 = vrot.lane.b32.xlu0 %v4701_v52, %s3759_s8 }
 0x1ae   : > { %v1865_v46 = vpop.permute.xlu1 %1864  ;;  %v1835_v26 = vpop.permute.xlu0 %1834 }
 0x1af   : > { %1935 = vst.msk [vmem:[#allocation2 + $0x68] sm:$0xf] %vm1908_vm6, %v1865_v46  ;;  %1920 = vst.msk [vmem:[#allocation2 + $0x2c] sm:$0xf] %vm1908_vm6, %v1835_v26  ;;  %v3490_v46 = vpack.c.bf16 %v3084_v38, %v3084_v38 }
 0x1b0   : > { %1596 = vrot.lane.b32.xlu1 %v4711_v13, %s3759_s8  ;;  %1594 = vrot.lane.b32.xlu0 %v4713_v62, %s3759_s8 }
 0x1b2   : > { %v2090_v5 = vpop.permute.xlu1 %2089  ;;  %v1867_v8 = vpop.permute.xlu0 %1866 }
 0x1b3   : > { %2176 = vst.msk [vmem:[#allocation2 + $0x28] sm:$0xf] %vm2165_vm7, %v2090_v5 }
 0x1b4   : > { %1936 = vst.msk [vmem:[#allocation2 + $0x6c] sm:$0xf] %vm1908_vm6, %v1867_v8  ;;  %1822 = vrot.lane.b32.xlu1 %v3477_v63, %s3760_s9  ;;  %1820 = vrot.lane.b32.xlu0 %v3476_v6, %s3760_s9 }
 0x1b6   : > { %v2122_v11 = vpop.permute.xlu1 %2121  ;;  %v2092_v49 = vpop.permute.xlu0 %2091 }
 0x1b7   : > { %2192 = vst.msk [vmem:[#allocation2 + $0x68] sm:$0xf] %vm2165_vm7, %v2122_v11  ;;  %2177 = vst.msk [vmem:[#allocation2 + $0x2c] sm:$0xf] %vm2165_vm7, %v2092_v49  ;;  %v2954_v49 = vld [vmem:[%s3845_s30 + $0xd9] sm:$0xff] }
 0x1b8   : > { %1854 = vrot.lane.b32.xlu1 %v3493_v21, %s3760_s9  ;;  %1852 = vrot.lane.b32.xlu0 %v3492_v48, %s3760_s9 }
 0x1ba   : > { %v2347_v53 = vpop.permute.xlu1 %2346  ;;  %v2124_v40 = vpop.permute.xlu0 %2123 }
 0x1bb   : > { %2433 = vst.msk [vmem:[#allocation2 + $0x28] sm:$0xf] %vm2422_vm8, %v2347_v53 }
 0x1bc   : > { %2193 = vst.msk [vmem:[#allocation2 + $0x6c] sm:$0xf] %vm2165_vm7, %v2124_v40  ;;  %2079 = vrot.lane.b32.xlu1 %v4589_v31, %s3761_s10  ;;  %2077 = vrot.lane.b32.xlu0 %v4591_v44, %s3761_s10  ;;  %v2941_v31 = vld [vmem:[%s3845_s30 + $0x39] sm:$0xff]  ;;  %v2940_v44 = vld [vmem:[%s3845_s30 + $0x31] sm:$0xff] }
 0x1be   : > { %v2379_v54 = vpop.permute.xlu1 %2378  ;;  %v2349_v58 = vpop.permute.xlu0 %2348 }
 0x1bf   : > { %2449 = vst.msk [vmem:[#allocation2 + $0x68] sm:$0xf] %vm2422_vm8, %v2379_v54  ;;  %2434 = vst.msk [vmem:[#allocation2 + $0x2c] sm:$0xf] %vm2422_vm8, %v2349_v58 }
 0x1c0   : > { %2111 = vrot.lane.b32.xlu1 %v4601_v18, %s3761_s10  ;;  %2109 = vrot.lane.b32.xlu0 %v4603_v47, %s3761_s10  ;;  %v4759_v47 = vpack.c.bf16 %v2941_v31, %v2941_v31 }
 0x1c2   : > { %v1091_v1 = vpop.permute.xlu1 %1090  ;;  %v2381_v35 = vpop.permute.xlu0 %2380 }
 0x1c3   : > { %1162 = vst.msk [vmem:[#allocation2 + $0x64] sm:$0xf] %vm1136_vm3, %v1091_v1  ;;  %v3003_v1 = vld [vmem:[%s3845_s30 + $0x22] sm:$0xff] }
 0x1c4   : > { %2450 = vst.msk [vmem:[#allocation2 + $0x6c] sm:$0xf] %vm2422_vm8, %v2381_v35  ;;  %2336 = vrot.lane.b32.xlu1 %v4613_v24, %s3762_s11  ;;  %2334 = vrot.lane.b32.xlu0 %v4615_v34, %s3762_s11  ;;  %v4761_v24 = vpack.c.bf16 %v2940_v44, %v2940_v44  ;;  %v3002_v35 = vld [vmem:[%s3845_s30 + $0x1a] sm:$0xff] }
 0x1c6   : > { %v1316_v18 = vpop.permute.xlu1 %1315  ;;  %v1314_v10 = vpop.permute.xlu0 %1313  ;;  %v3666_v34 = vld [vmem:[#allocation2 + $0x28] sm:$0xff]  }
 0x1c7   : > { %1403 = vst.msk [vmem:[#allocation2 + $0x24] sm:$0xf] %vm1393_vm4, %v1316_v18  ;;  %1402 = vst.msk [vmem:[#allocation2 + $0x20] sm:$0xf] %vm1393_vm4, %v1314_v10  ;;  %v2594_v60 = vsel %vm2574_vm9, %v3666_v34, 0  ;;  %v3441_v18 = vpack.c.bf16 %v3003_v1, %v3003_v1  ;;  %v3440_v10 = vpack.c.bf16 %v3002_v35, %v3002_v35  ;;  %v3019_v34 = vld [vmem:[%s3845_s30 + $0xe2] sm:$0xff] }
 0x1c8   : > { %2368 = vrot.lane.b32.xlu1 %v4625_v42, %s3762_s11  ;;  %2366 = vrot.lane.b32.xlu0 %v4627_v43, %s3762_s11  ;;  %v4771_v42 = vpack.c.bf16 %v2957_v39, %v2957_v39  ;;  %v4773_v43 = vpack.c.bf16 %v2956_v57, %v2956_v57  ;;  %v3018_v39 = vld [vmem:[%s3845_s30 + $0xda] sm:$0xff] }
 0x1ca   : > { %v1348_v25 = vpop.permute.xlu1 %1347  ;;  %v1346_v15 = vpop.permute.xlu0 %1345 }
 0x1cb   : > { %v3665_v20 = vld [vmem:[#allocation2 + $0x68] sm:$0xff]   ;;  %1419 = vst.msk [vmem:[#allocation2 + $0x64] sm:$0xf] %vm1393_vm4, %v1348_v25  ;;  %1418 = vst.msk [vmem:[#allocation2 + $0x60] sm:$0xf] %vm1393_vm4, %v1346_v15  ;;  %v3457_v15 = vpack.c.bf16 %v3019_v34, %v3019_v34 }
 0x1cc   : > { %1303 = vrot.lane.b32.xlu1 %v4759_v47, %s3758_s7  ;;  %1301 = vrot.lane.b32.xlu0 %v4761_v24, %s3758_s7 }
 0x1cd   : > { %3589 = vmatprep.subr.msk.bf16.mxu0 %vm2574_vm9, %v3665_v20  ;;  %v3456_v20 = vpack.c.bf16 %v3018_v39, %v3018_v39 }
 0x1ce   : > { %v1573_v9 = vpop.permute.xlu1 %1572  ;;  %v1571_v29 = vpop.permute.xlu0 %1570  ;;  %3574 = vmatpush3.bf16.xpose.msra.mxu0 %v2594_v60  ;;  %v3067_v60 = vld [vmem:[%s3845_s30 + $0x38] sm:$0xff] }
 0x1cf   : > { %1660 = vst.msk [vmem:[#allocation2 + $0x24] sm:$0xf] %vm1650_vm5, %v1573_v9  ;;  %1659 = vst.msk [vmem:[#allocation2 + $0x20] sm:$0xf] %vm1650_vm5, %v1571_v29  ;;  %v3473_v29 = vpack.c.bf16 %v3067_v60, %v3067_v60 }
 0x1d0   : > { %1335 = vrot.lane.b32.xlu1 %v4771_v42, %s3758_s7  ;;  %1333 = vrot.lane.b32.xlu0 %v4773_v43, %s3758_s7 }
 0x1d2   : > { %v1605_v27 = vpop.permute.xlu1 %1604  ;;  %v1603_v50 = vpop.permute.xlu0 %1602 }
 0x1d3   : > { %1676 = vst.msk [vmem:[#allocation2 + $0x64] sm:$0xf] %vm1650_vm5, %v1605_v27  ;;  %1675 = vst.msk [vmem:[#allocation2 + $0x60] sm:$0xf] %vm1650_vm5, %v1603_v50  ;;  %v3082_v27 = vld [vmem:[%s3845_s30 + $0xf0] sm:$0xff] }
 0x1d4   : > { %1560 = vrot.lane.b32.xlu1 %v4785_v37, %s3759_s8  ;;  %1558 = vrot.lane.b32.xlu0 %v4787_v22, %s3759_s8 }
 0x1d6   : > { %v1831_v7 = vpop.permute.xlu1 %1830  ;;  %v1829_v55 = vpop.permute.xlu0 %1828 }
 0x1d7   : > { %1918 = vst.msk [vmem:[#allocation2 + $0x24] sm:$0xf] %vm1908_vm6, %v1831_v7  ;;  %1917 = vst.msk [vmem:[#allocation2 + $0x20] sm:$0xf] %vm1908_vm6, %v1829_v55  ;;  %v3488_v7 = vpack.c.bf16 %v3082_v27, %v3082_v27 }
 0x1d8   : > { %1592 = vrot.lane.b32.xlu1 %v4797_v51, %s3759_s8  ;;  %1590 = vrot.lane.b32.xlu0 %v4799_v36, %s3759_s8 }
 0x1da   : > { %v1863_v12 = vpop.permute.xlu1 %1862  ;;  %v1861_v17 = vpop.permute.xlu0 %1860 }
 0x1db   : > { %1934 = vst.msk [vmem:[#allocation2 + $0x64] sm:$0xf] %vm1908_vm6, %v1863_v12  ;;  %1933 = vst.msk [vmem:[#allocation2 + $0x60] sm:$0xf] %vm1908_vm6, %v1861_v17 }
 0x1dc   : > { %1818 = vrot.lane.b32.xlu1 %v3475_v32, %s3760_s9  ;;  %1816 = vrot.lane.b32.xlu0 %v3474_v2, %s3760_s9 }
 0x1de   : > { %v2088_v26 = vpop.permute.xlu1 %2087  ;;  %v2086_v63 = vpop.permute.xlu0 %2085 }
 0x1df   : > { %2175 = vst.msk [vmem:[#allocation2 + $0x24] sm:$0xf] %vm2165_vm7, %v2088_v26  ;;  %2174 = vst.msk [vmem:[#allocation2 + $0x20] sm:$0xf] %vm2165_vm7, %v2086_v63  ;;  %v2488_v63 = vld [vmem:[%s5030_s2] sm:$0xff] }
 0x1e0   : > { %1850 = vrot.lane.b32.xlu1 %v3491_v19, %s3760_s9  ;;  %1848 = vrot.lane.b32.xlu0 %v3490_v46, %s3760_s9 }
 0x1e2   : > { %v2120_v6 = vpop.permute.xlu1 %2119  ;;  %v2118_v33 = vpop.permute.xlu0 %2117 }
 0x1e3   : > { %2191 = vst.msk [vmem:[#allocation2 + $0x64] sm:$0xf] %vm2165_vm7, %v2120_v6  ;;  %2190 = vst.msk [vmem:[#allocation2 + $0x60] sm:$0xf] %vm2165_vm7, %v2118_v33 }
 0x1e4   : > { %2075 = vrot.lane.b32.xlu1 %v4673_v41, %s3761_s10  ;;  %2073 = vrot.lane.b32.xlu0 %v4675_v23, %s3761_s10  ;;  %v2939_v41 = vld [vmem:[%s3845_s30 + $0x21] sm:$0xff]  ;;  %v2938_v23 = vld [vmem:[%s3845_s30 + $0x19] sm:$0xff] }
 0x1e6   : > { %v2345_v30 = vpop.permute.xlu1 %2344  ;;  %v2343_v5 = vpop.permute.xlu0 %2342 }
 0x1e7   : > { %2432 = vst.msk [vmem:[#allocation2 + $0x24] sm:$0xf] %vm2422_vm8, %v2345_v30  ;;  %2431 = vst.msk [vmem:[#allocation2 + $0x20] sm:$0xf] %vm2422_vm8, %v2343_v5 }
 0x1e8   : > { %2107 = vrot.lane.b32.xlu1 %v4687_v59, %s3761_s10  ;;  %2105 = vrot.lane.b32.xlu0 %v4689_v14, %s3761_s10  ;;  %v3409_v14 = vpack.c.bf16 %v2939_v41, %v2939_v41 }
 0x1ea   : > { %v2377_v8 = vpop.permute.xlu1 %2376  ;;  %v2375_v21 = vpop.permute.xlu0 %2374 }
 0x1eb   : > { %2448 = vst.msk [vmem:[#allocation2 + $0x64] sm:$0xf] %vm2422_vm8, %v2377_v8  ;;  %2447 = vst.msk [vmem:[#allocation2 + $0x60] sm:$0xf] %vm2422_vm8, %v2375_v21 }
 0x1ec   : > { %2332 = vrot.lane.b32.xlu1 %v4699_v45, %s3762_s11  ;;  %2330 = vrot.lane.b32.xlu0 %v4701_v52, %s3762_s11  ;;  %v3408_v45 = vpack.c.bf16 %v2938_v23, %v2938_v23  ;;  %v2955_v52 = vld [vmem:[%s3845_s30 + $0xe1] sm:$0xff]  ;;  %s2692_s30 = sshll.u32 %s190_s29, 4  ;;  %s2693_s30 = int_to_ptr.vmem [resolvable:$true] %s2692_s30 }
 0x1ee   : > { %v1312_v59 = vpop.permute.xlu1 %1311  ;;  %v1310_v48 = vpop.permute.xlu0 %1309  ;;  %v3668_v11 = vld [vmem:[#allocation2 + $0x20] sm:$0xff]  }
 0x1ef   : > { %1401 = vst.msk [vmem:[#allocation2 + $0x1c] sm:$0xf] %vm1393_vm4, %v1312_v59  ;;  %1400 = vst.msk [vmem:[#allocation2 + $0x18] sm:$0xf] %vm1393_vm4, %v1310_v48  ;;  %v2591_v58 = vsel %vm2574_vm9, %v3668_v11, 0 }
 0x1f0   : > { %2364 = vrot.lane.b32.xlu1 %v4711_v13, %s3762_s11  ;;  %2362 = vrot.lane.b32.xlu0 %v4713_v62, %s3762_s11  ;;  %v3425_v13 = vpack.c.bf16 %v2955_v52, %v2955_v52  ;;  %v3424_v62 = vpack.c.bf16 %v2954_v49, %v2954_v49 }
 0x1f2   : > { %v1344_v53 = vpop.permute.xlu1 %1343  ;;  %v1342_v40 = vpop.permute.xlu0 %1341  ;;  %v3667_v54 = vld [vmem:[#allocation2 + $0x60] sm:$0xff]  }
 0x1f3   : > { %1417 = vst.msk [vmem:[#allocation2 + $0x5c] sm:$0xf] %vm1393_vm4, %v1344_v53  ;;  %1416 = vst.msk [vmem:[#allocation2 + $0x58] sm:$0xf] %vm1393_vm4, %v1342_v40  ;;  %3590 = vmatprep.subr.msk.bf16.mxu0 %vm2574_vm9, %v3667_v54 }
 0x1f4   : > { %1299 = vrot.lane.b32.xlu1 %v3409_v14, %s3758_s7  ;;  %1297 = vrot.lane.b32.xlu0 %v3408_v45, %s3758_s7 }
 0x1f5   : > { %3576 = vmatpush3.bf16.xpose.msra.mxu0 %v2591_v58 }
 0x1f6   : > { %v1569_v31 = vpop.permute.xlu1 %1568  ;;  %v1567_v44 = vpop.permute.xlu0 %1566 }
 0x1f7   : > { %1658 = vst.msk [vmem:[#allocation2 + $0x1c] sm:$0xf] %vm1650_vm5, %v1569_v31  ;;  %1657 = vst.msk [vmem:[#allocation2 + $0x18] sm:$0xf] %vm1650_vm5, %v1567_v44 }
 0x1f8   : > { %1331 = vrot.lane.b32.xlu1 %v3425_v13, %s3758_s7  ;;  %1329 = vrot.lane.b32.xlu0 %v3424_v62, %s3758_s7  ;;  %s2676_s7 = scalar_lea.sflag [#allocation4], %s188_s26 }
 0x1fa   : > { %v1601_v57 = vpop.permute.xlu1 %1600  ;;  %v1599_v25 = vpop.permute.xlu0 %1598 }
 0x1fb   : > { %1674 = vst.msk [vmem:[#allocation2 + $0x5c] sm:$0xf] %vm1650_vm5, %v1601_v57  ;;  %1673 = vst.msk [vmem:[#allocation2 + $0x58] sm:$0xf] %vm1650_vm5, %v1599_v25 }
 0x1fc   : > { %1556 = vrot.lane.b32.xlu1 %v3441_v18, %s3759_s8  ;;  %1554 = vrot.lane.b32.xlu0 %v3440_v10, %s3759_s8 }
 0x1fe   : > { %v1827_v56 = vpop.permute.xlu1 %1826  ;;  %v1825_v9 = vpop.permute.xlu0 %1824 }
 0x1ff   : > { %1916 = vst.msk [vmem:[#allocation2 + $0x1c] sm:$0xf] %vm1908_vm6, %v1827_v56  ;;  %1915 = vst.msk [vmem:[#allocation2 + $0x18] sm:$0xf] %vm1908_vm6, %v1825_v9 }
 0x200   : > { %1588 = vrot.lane.b32.xlu1 %v3457_v15, %s3759_s8  ;;  %1586 = vrot.lane.b32.xlu0 %v3456_v20, %s3759_s8  ;;  %s3677_s8 = scalar_lea.vmem %s2693_s30, 256 }
 0x201   : > { %p3678_p12 = scmp.ne.s32.totalorder %s2693_s30, %s3677_s8 }
 0x202   : > { %v1859_v50 = vpop.permute.xlu1 %1858  ;;  %v1857_v28 = vpop.permute.xlu0 %1856 }
 0x203   : > { %1932 = vst.msk [vmem:[#allocation2 + $0x5c] sm:$0xf] %vm1908_vm6, %v1859_v50  ;;  %1931 = vst.msk [vmem:[#allocation2 + $0x58] sm:$0xf] %vm1908_vm6, %v1857_v28  ;;  %p3679_p13 = pnand %p3678_p12, %p3825_p4 }
 0x204   : > { %1814 = vrot.lane.b32.xlu1 %v3473_v29, %s3760_s9  ;;  %1812 = vrot.lane.b32.xlu0 %v3472_v3, %s3760_s9 }
 0x205   : > { %p3680_p0 = pneg %p3679_p13 }
 0x206   : > { %v2084_v55 = vpop.permute.xlu1 %2083  ;;  %v2082_v32 = vpop.permute.xlu0 %2081 }
 0x207   : > { %2173 = vst.msk [vmem:[#allocation2 + $0x1c] sm:$0xf] %vm2165_vm7, %v2084_v55  ;;  %2172 = vst.msk [vmem:[#allocation2 + $0x18] sm:$0xf] %vm2165_vm7, %v2082_v32 }
 0x208   : > { %1846 = vrot.lane.b32.xlu1 %v3489_v0, %s3760_s9  ;;  %1844 = vrot.lane.b32.xlu0 %v3488_v7, %s3760_s9  ;;  %s3681_s9 = sshll.u32 %s3764_s15, 4  ;;  %s3682_s9 = int_to_ptr.vmem [resolvable:$false] %s3681_s9 }
 0x209   : > { %p3684_p1 = scmp.lt.s32.totalorder %s2693_s30, %s3682_s9 }
 0x20a   : > { %v2116_v2 = vpop.permute.xlu1 %2115  ;;  %v2114_v4 = vpop.permute.xlu0 %2113 }
 0x20b   : > { %2189 = vst.msk [vmem:[#allocation2 + $0x5c] sm:$0xf] %vm2165_vm7, %v2116_v2  ;;  %2188 = vst.msk [vmem:[#allocation2 + $0x58] sm:$0xf] %vm2165_vm7, %v2114_v4 }
 0x20c   : > { %2071 = vrot.lane.b32.xlu1 %v4759_v47, %s3761_s10  ;;  %2069 = vrot.lane.b32.xlu0 %v4761_v24, %s3761_s10  ;;  %v4902_v47 = vld [vmem:[%s5029_s1] sm:$0xf] }
 0x20d   : > { %3585 = vmatprep.mubr.msk.bf16.mxu0 %vm2574_vm9, %v4902_v47 }
 0x20e   : > { %v2341_v38 = vpop.permute.xlu1 %2340  ;;  %v2339_v12 = vpop.permute.xlu0 %2338 }
 0x20f   : > { %2430 = vst.msk [vmem:[#allocation2 + $0x1c] sm:$0xf] %vm2422_vm8, %v2341_v38  ;;  %2429 = vst.msk [vmem:[#allocation2 + $0x18] sm:$0xf] %vm2422_vm8, %v2339_v12 }
 0x210   : > { %2103 = vrot.lane.b32.xlu1 %v4771_v42, %s3761_s10  ;;  %2101 = vrot.lane.b32.xlu0 %v4773_v43, %s3761_s10  ;;  %s3683_s10 = scalar_lea.vmem %s3682_s9, 512 }
 0x211   : > { %p3685_p2 = scmp.lt.s32.totalorder %s3683_s10, %s3677_s8 }
 0x212   : > { %v2373_v17 = vpop.permute.xlu1 %2372  ;;  %v2371_v19 = vpop.permute.xlu0 %2370 }
 0x213   : > { %2446 = vst.msk [vmem:[#allocation2 + $0x5c] sm:$0xf] %vm2422_vm8, %v2373_v17  ;;  %2445 = vst.msk [vmem:[#allocation2 + $0x58] sm:$0xf] %vm2422_vm8, %v2371_v19  ;;  %p3686_p3 = por %p3685_p2, %p3684_p1 }
 0x214   : > { %2328 = vrot.lane.b32.xlu1 %v4785_v37, %s3762_s11  ;;  %2326 = vrot.lane.b32.xlu0 %v4787_v22, %s3762_s11 }
 0x215   : > { %p3687_p5 = pnand %p3686_p3, %p3680_p0 }
 0x216   : > { %v1308_v24 = vpop.permute.xlu1 %1307  ;;  %v1306_v42 = vpop.permute.xlu0 %1305  ;;  %v3670_v43 = vld [vmem:[#allocation2 + $0x18] sm:$0xff]  }
 0x217   : > { %1399 = vst.msk [vmem:[#allocation2 + $0x14] sm:$0xf] %vm1393_vm4, %v1308_v24  ;;  %1398 = vst.msk [vmem:[#allocation2 + $0x10] sm:$0xf] %vm1393_vm4, %v1306_v42  ;;  %v2588_v26 = vsel %vm2574_vm9, %v3670_v43, 0 }
 0x218   : > { %2360 = vrot.lane.b32.xlu1 %v4797_v51, %s3762_s11  ;;  %2358 = vrot.lane.b32.xlu0 %v4799_v36, %s3762_s11  ;;  %v3763_v51 = vmov 0  }
 0x219   : > { %3660 = vset.pattern.permute.xlu0 %v3763_v51 }
 0x21a   : > { %v1340_v37 = vpop.permute.xlu1 %1339  ;;  %v1338_v22 = vpop.permute.xlu0 %1337  ;;  %v3669_v46 = vld [vmem:[#allocation2 + $0x58] sm:$0xff]  }
 0x21b   : > { %1415 = vst.msk [vmem:[#allocation2 + $0x54] sm:$0xf] %vm1393_vm4, %v1340_v37  ;;  %1414 = vst.msk [vmem:[#allocation2 + $0x50] sm:$0xf] %vm1393_vm4, %v1338_v22  ;;  %3591 = vmatprep.subr.msk.bf16.mxu0 %vm2574_vm9, %v3669_v46 }
 0x21c   : > { %3578 = vmatpush3.bf16.xpose.msra.mxu0 %v2588_v26  ;;  %2491 = vperm.xlu0 %3660, %v2488_v63  }
 0x21e   : > { %v1565_v36 = vpop.permute.xlu1 %1564  ;;  %v1563_v6 = vpop.permute.xlu0 %1562 }
 0x21f   : > { %1656 = vst.msk [vmem:[#allocation2 + $0x14] sm:$0xf] %vm1650_vm5, %v1565_v36  ;;  %1655 = vst.msk [vmem:[#allocation2 + $0x10] sm:$0xf] %vm1650_vm5, %v1563_v6 }
 0x222   : > { %v1597_v33 = vpop.permute.xlu1 %1596  ;;  %v1595_v30 = vpop.permute.xlu0 %1594 }
 0x223   : > { %1672 = vst.msk [vmem:[#allocation2 + $0x54] sm:$0xf] %vm1650_vm5, %v1597_v33  ;;  %1671 = vst.msk [vmem:[#allocation2 + $0x50] sm:$0xf] %vm1650_vm5, %v1595_v30 }
 0x226   : > { %v1823_v5 = vpop.permute.xlu1 %1822  ;;  %v1821_v8 = vpop.permute.xlu0 %1820 }
 0x227   : > { %1914 = vst.msk [vmem:[#allocation2 + $0x14] sm:$0xf] %vm1908_vm6, %v1823_v5  ;;  %1913 = vst.msk [vmem:[#allocation2 + $0x10] sm:$0xf] %vm1908_vm6, %v1821_v8 }
 0x22a   : > { %v1855_v21 = vpop.permute.xlu1 %1854  ;;  %v1853_v41 = vpop.permute.xlu0 %1852 }
 0x22b   : > { %1930 = vst.msk [vmem:[#allocation2 + $0x54] sm:$0xf] %vm1908_vm6, %v1855_v21  ;;  %1929 = vst.msk [vmem:[#allocation2 + $0x50] sm:$0xf] %vm1908_vm6, %v1853_v41 }
 0x22e   : > { %v2080_v23 = vpop.permute.xlu1 %2079  ;;  %v2078_v59 = vpop.permute.xlu0 %2077 }
 0x22f   : > { %2171 = vst.msk [vmem:[#allocation2 + $0x14] sm:$0xf] %vm2165_vm7, %v2080_v23  ;;  %2170 = vst.msk [vmem:[#allocation2 + $0x10] sm:$0xf] %vm2165_vm7, %v2078_v59 }
 0x232   : > { %v2112_v48 = vpop.permute.xlu1 %2111  ;;  %v2110_v14 = vpop.permute.xlu0 %2109 }
 0x233   : > { %2187 = vst.msk [vmem:[#allocation2 + $0x54] sm:$0xf] %vm2165_vm7, %v2112_v48  ;;  %2186 = vst.msk [vmem:[#allocation2 + $0x50] sm:$0xf] %vm2165_vm7, %v2110_v14 }
 0x236   : > { %v2337_v45 = vpop.permute.xlu1 %2336  ;;  %v2335_v11 = vpop.permute.xlu0 %2334 }
 0x237   : > { %2428 = vst.msk [vmem:[#allocation2 + $0x14] sm:$0xf] %vm2422_vm8, %v2337_v45  ;;  %2427 = vst.msk [vmem:[#allocation2 + $0x10] sm:$0xf] %vm2422_vm8, %v2335_v11 }
 0x23a   : > { %v2369_v52 = vpop.permute.xlu1 %2368  ;;  %v2367_v49 = vpop.permute.xlu0 %2366 }
 0x23b   : > { %2444 = vst.msk [vmem:[#allocation2 + $0x54] sm:$0xf] %vm2422_vm8, %v2369_v52  ;;  %2443 = vst.msk [vmem:[#allocation2 + $0x50] sm:$0xf] %vm2422_vm8, %v2367_v49 }
 0x23e   : > { %v1304_v53 = vpop.permute.xlu1 %1303  ;;  %v1302_v40 = vpop.permute.xlu0 %1301  ;;  %v3672_v54 = vld [vmem:[#allocation2 + $0x10] sm:$0xff]  }
 0x23f   : > { %1397 = vst.msk [vmem:[#allocation2 + $0xc] sm:$0xf] %vm1393_vm4, %v1304_v53  ;;  %1396 = vst.msk [vmem:[#allocation2 + $0x8] sm:$0xf] %vm1393_vm4, %v1302_v40  ;;  %v2585_v1 = vsel %vm2574_vm9, %v3672_v54, 0 }
 0x242   : > { %v1336_v13 = vpop.permute.xlu1 %1335  ;;  %v1334_v62 = vpop.permute.xlu0 %1333  ;;  %v3671_v58 = vld [vmem:[#allocation2 + $0x50] sm:$0xff]  }
 0x243   : > { %1413 = vst.msk [vmem:[#allocation2 + $0x4c] sm:$0xf] %vm1393_vm4, %v1336_v13  ;;  %1412 = vst.msk [vmem:[#allocation2 + $0x48] sm:$0xf] %vm1393_vm4, %v1334_v62  ;;  %3592 = vmatprep.subr.msk.bf16.mxu0 %vm2574_vm9, %v3671_v58 }
 0x244   : > { %3580 = vmatpush3.bf16.xpose.msra.mxu0 %v2585_v1 }
 0x246   : > { %v1561_v35 = vpop.permute.xlu1 %1560  ;;  %v1559_v31 = vpop.permute.xlu0 %1558 }
 0x247   : > { %1654 = vst.msk [vmem:[#allocation2 + $0xc] sm:$0xf] %vm1650_vm5, %v1561_v35  ;;  %1653 = vst.msk [vmem:[#allocation2 + $0x8] sm:$0xf] %vm1650_vm5, %v1559_v31 }
 0x24a   : > { %v1593_v44 = vpop.permute.xlu1 %1592  ;;  %v1591_v18 = vpop.permute.xlu0 %1590 }
 0x24b   : > { %1670 = vst.msk [vmem:[#allocation2 + $0x4c] sm:$0xf] %vm1650_vm5, %v1593_v44  ;;  %1669 = vst.msk [vmem:[#allocation2 + $0x48] sm:$0xf] %vm1650_vm5, %v1591_v18 }
 0x24e   : > { %v1819_v10 = vpop.permute.xlu1 %1818  ;;  %v1817_v34 = vpop.permute.xlu0 %1816 }
 0x24f   : > { %1912 = vst.msk [vmem:[#allocation2 + $0xc] sm:$0xf] %vm1908_vm6, %v1819_v10  ;;  %1911 = vst.msk [vmem:[#allocation2 + $0x8] sm:$0xf] %vm1908_vm6, %v1817_v34 }
 0x252   : > { %v1851_v39 = vpop.permute.xlu1 %1850  ;;  %v1849_v57 = vpop.permute.xlu0 %1848 }
 0x253   : > { %1928 = vst.msk [vmem:[#allocation2 + $0x4c] sm:$0xf] %vm1908_vm6, %v1851_v39  ;;  %1927 = vst.msk [vmem:[#allocation2 + $0x48] sm:$0xf] %vm1908_vm6, %v1849_v57 }
 0x256   : > { %v2076_v25 = vpop.permute.xlu1 %2075  ;;  %v2074_v15 = vpop.permute.xlu0 %2073 }
 0x257   : > { %2169 = vst.msk [vmem:[#allocation2 + $0xc] sm:$0xf] %vm2165_vm7, %v2076_v25  ;;  %2168 = vst.msk [vmem:[#allocation2 + $0x8] sm:$0xf] %vm2165_vm7, %v2074_v15 }
 0x25a   : > { %v2108_v20 = vpop.permute.xlu1 %2107  ;;  %v2106_v60 = vpop.permute.xlu0 %2105 }
 0x25b   : > { %2185 = vst.msk [vmem:[#allocation2 + $0x4c] sm:$0xf] %vm2165_vm7, %v2108_v20  ;;  %2184 = vst.msk [vmem:[#allocation2 + $0x48] sm:$0xf] %vm2165_vm7, %v2106_v60 }
 0x25e   : > { %v2333_v61 = vpop.permute.xlu1 %2332  ;;  %v2331_v56 = vpop.permute.xlu0 %2330 }
 0x25f   : > { %2426 = vst.msk [vmem:[#allocation2 + $0xc] sm:$0xf] %vm2422_vm8, %v2333_v61  ;;  %2425 = vst.msk [vmem:[#allocation2 + $0x8] sm:$0xf] %vm2422_vm8, %v2331_v56 }
 0x262   : > { %v2365_v9 = vpop.permute.xlu1 %2364  ;;  %v2363_v29 = vpop.permute.xlu0 %2362 }
 0x263   : > { %2442 = vst.msk [vmem:[#allocation2 + $0x4c] sm:$0xf] %vm2422_vm8, %v2365_v9  ;;  %2441 = vst.msk [vmem:[#allocation2 + $0x48] sm:$0xf] %vm2422_vm8, %v2363_v29 }
 0x266   : > { %v1300_v3 = vpop.permute.xlu1 %1299  ;;  %v1298_v16 = vpop.permute.xlu0 %1297  ;;  %v3674_v27 = vld [vmem:[#allocation2 + $0x8] sm:$0xff]  }
 0x267   : > { %1395 = vst.msk [vmem:[#allocation2 + $0x4] sm:$0xf] %vm1393_vm4, %v1300_v3  ;;  %1394 = vst.msk [vmem:[#allocation2] sm:$0xf] %vm1393_vm4, %v1298_v16  ;;  %v2582_v7 = vsel %vm2574_vm9, %v3674_v27, 0 }
 0x26a   : > { %v1332_v50 = vpop.permute.xlu1 %1331  ;;  %v1330_v28 = vpop.permute.xlu0 %1329  ;;  %v3673_v0 = vld [vmem:[#allocation2 + $0x48] sm:$0xff]  }
 0x26b   : > { %1411 = vst.msk [vmem:[#allocation2 + $0x44] sm:$0xf] %vm1393_vm4, %v1332_v50  ;;  %1410 = vst.msk [vmem:[#allocation2 + $0x40] sm:$0xf] %vm1393_vm4, %v1330_v28  ;;  %3593 = vmatprep.subr.msk.bf16.mxu0 %vm2574_vm9, %v3673_v0 }
 0x26c   : > { %3582 = vmatpush3.bf16.xpose.msra.mxu0 %v2582_v7 }
 0x26e   : > { %v1557_v55 = vpop.permute.xlu1 %1556  ;;  %v1555_v32 = vpop.permute.xlu0 %1554 }
 0x26f   : > { %1652 = vst.msk [vmem:[#allocation2 + $0x4] sm:$0xf] %vm1650_vm5, %v1557_v55  ;;  %1651 = vst.msk [vmem:[#allocation2] sm:$0xf] %vm1650_vm5, %v1555_v32 }
 0x272   : > { %v1589_v2 = vpop.permute.xlu1 %1588  ;;  %v1587_v4 = vpop.permute.xlu0 %1586 }
 0x273   : > { %1668 = vst.msk [vmem:[#allocation2 + $0x44] sm:$0xf] %vm1650_vm5, %v1589_v2  ;;  %1667 = vst.msk [vmem:[#allocation2 + $0x40] sm:$0xf] %vm1650_vm5, %v1587_v4 }
 0x276   : > { %v1815_v38 = vpop.permute.xlu1 %1814  ;;  %v1813_v12 = vpop.permute.xlu0 %1812 }
 0x277   : > { %1910 = vst.msk [vmem:[#allocation2 + $0x4] sm:$0xf] %vm1908_vm6, %v1815_v38  ;;  %1909 = vst.msk [vmem:[#allocation2] sm:$0xf] %vm1908_vm6, %v1813_v12 }
 0x27a   : > { %v1847_v17 = vpop.permute.xlu1 %1846  ;;  %v1845_v19 = vpop.permute.xlu0 %1844 }
 0x27b   : > { %1926 = vst.msk [vmem:[#allocation2 + $0x44] sm:$0xf] %vm1908_vm6, %v1847_v17  ;;  %1925 = vst.msk [vmem:[#allocation2 + $0x40] sm:$0xf] %vm1908_vm6, %v1845_v19 }
 0x27e   : > { %v2072_v24 = vpop.permute.xlu1 %2071  ;;  %v2070_v42 = vpop.permute.xlu0 %2069 }
 0x27f   : > { %2167 = vst.msk [vmem:[#allocation2 + $0x4] sm:$0xf] %vm2165_vm7, %v2072_v24  ;;  %2166 = vst.msk [vmem:[#allocation2] sm:$0xf] %vm2165_vm7, %v2070_v42 }
 0x282   : > { %v2104_v43 = vpop.permute.xlu1 %2103  ;;  %v2102_v37 = vpop.permute.xlu0 %2101 }
 0x283   : > { %2183 = vst.msk [vmem:[#allocation2 + $0x44] sm:$0xf] %vm2165_vm7, %v2104_v43  ;;  %2182 = vst.msk [vmem:[#allocation2 + $0x40] sm:$0xf] %vm2165_vm7, %v2102_v37 }
 0x286   : > { %v2329_v22 = vpop.permute.xlu1 %2328  ;;  %v2327_v46 = vpop.permute.xlu0 %2326 }
 0x287   : > { %2424 = vst.msk [vmem:[#allocation2 + $0x4] sm:$0xf] %vm2422_vm8, %v2329_v22  ;;  %2423 = vst.msk [vmem:[#allocation2] sm:$0xf] %vm2422_vm8, %v2327_v46 }
 0x28a   : > { %v2361_v26 = vpop.permute.xlu1 %2360  ;;  %v2359_v63 = vpop.permute.xlu0 %2358 }
 0x28b   : > { %2440 = vst.msk [vmem:[#allocation2 + $0x44] sm:$0xf] %vm2422_vm8, %v2361_v26  ;;  %2439 = vst.msk [vmem:[#allocation2 + $0x40] sm:$0xf] %vm2422_vm8, %v2359_v63 }
 0x28e   : > { %v3676_v51 = vld [vmem:[#allocation2] sm:$0xff]  }
 0x28f   : > { %v2579_v6 = vsel %vm2574_vm9, %v3676_v51, 0 }
 0x292   : > { %v3675_v36 = vld [vmem:[#allocation2 + $0x40] sm:$0xff]  }
 0x293   : > { %3594 = vmatprep.subr.msk.bf16.mxu0 %vm2574_vm9, %v3675_v36 }
 0x294   : > { %3584 = vmatpush3.bf16.xpose.msra.mxu0 %v2579_v6 }
 0x297   : > { %v2492_v33 = vpop.permute.xlu0 %2491 }
 0x29b   : > { %3586 = vmatmul.mubr.msk.bf16.vlgmr.msra.gmra.mxu0 %vm2574_vm9, %v4902_v47 }
 0x35b   : > { %v2660_v30 = vpop.f32.mrf.mxu0 }
 0x35c   : > { %v2661_v5 = vadd.f32 %v2660_v30, %v2492_v33 }
 0x35d   : > { %v2662_v8 = vpop.f32.mrf.mxu0 }
 0x35e   : > { %vm2667_vm10 = vcmp.ge.f32.partialorder %v2661_v5, 0.0  ;;  %v2669_v21 = vmul.f32 0.2, %v2661_v5  ;;  %v2663_v41 = vadd.f32 %v2662_v8, %v2492_v33 }
 0x35f   : > { %v2664_v23 = vpop.f32.mrf.mxu0 }
 0x360   : > { %v2671_v59 = vsel %vm2667_vm10, %v2661_v5, %v2669_v21  ;;  %vm2668_vm11 = vcmp.ge.f32.partialorder %v2663_v41, 0.0  ;;  %v2670_v48 = vmul.f32 0.2, %v2663_v41 }
 0x361   : > { %v2665_v14 = vpop.f32.mrf.mxu0  ;;  %2673 = vst [vmem:[%s190_s29] sm:$0xff] %v2671_v59 }
 0x362   : > { %v2672_v47 = vsel %vm2668_vm11, %v2663_v41, %v2670_v48 }
 0x363   : > { %2674 = vst [vmem:[%s190_s29 + $0x8] sm:$0xff] %v2672_v47 }
 0x364   : > { %3690 = shalt.err (!%p3687_p5)
}
 0x365   : > { %s3691_s11 = scalar_lea.hbm %s4988_s6, 256  ;;  %s3695_s21 = scalar_lea.hbm %s5031_s3, 512 }
 0x366   : > { %p3692_p6 = scmp.ne.s32.totalorder %s4988_s6, %s3691_s11  ;;  %p3696_p10 = scmp.lt.s32.totalorder %s4988_s6, %s5031_s3 }
 0x367   : > { %p3697_p11 = scmp.lt.s32.totalorder %s3695_s21, %s3691_s11 }
 0x368   : > { %p3693_p7 = pnand %p3692_p6, %p3825_p4 }
 0x369   : > { %p3698_p12 = por %p3697_p11, %p3696_p10 }
 0x36a   : > { %p3694_p9 = pneg %p3693_p7 }
 0x36c   : > { %p3699_p13 = pnand %p3698_p12, %p3694_p9 }
 0x36e   : > { %3702 = shalt.err (!%p3699_p13)
}
 0x36f   : > { %3596 = dma.vmem_to_hbm [thread:$0]  (%p3825_p4), %s2693_s30, 256, %s4988_s6, %s2676_s7  }
 0x370 PF: > { %p3602_p0 = scmp.ge.s32.totalorder %s3753_s17, 2  ;;  %s2704_s27 = sand.u32 1, %s3733_s12  }
 0x371   : > { %s2705_s28 = scalar_lea.sflag [#allocation4], %s2704_s27 }
 0x372   : > { %p3599_p1 = pnand %p3602_p0, %p3832_p8 }
 0x374   : > { %p3600_p2 = pneg %p3599_p1 }
 0x376   : > { %3728 = dma.done.wait (%p3600_p2), %s2705_s28, 256  }
 0x377   : > { %3730 = vsyncadd (%p3600_p2), %s2705_s28, 4294967040  ;;  %s16_s17 = sadd.s32 1, %s3753_s17   ;;  %s5034_s12 = smov %s3737_s13 }
 0x378   : > { %p13_p3 = scmp.ge.s32.totalorder %s16_s17, 4   ;;  %s5035_s13 = smov %s3741_s14 }
 0x379   : > { %s5036_s14 = smov %s3838_s25  ;;  %s5037_s15 = smov %s3749_s16 }
 0x37a   : > { %s5038_s16 = smov %s5040_s20  ;;  %15 = sbr.rel (!%p13_p3) target bundleno = 4 (0x4), region = 69 }
 0x37f   :  { %2710 = vsyncpa [#allocation4], 1 }
 0x380   :  { %2712 = vsyncpa [#allocation4 + $0x1], 1 }

</bundles_post_ra>
